<compile_context>
chip_gen: v6e
topology: v6e:2x2x1
jax: 0.10.0
libtpu: 0.0.40
codegen_flags: <defaults>
</compile_context>

<pallas_src>
import jax
import jax.numpy as jnp
from jax import lax
from jax.experimental import pallas as pl
from jax.experimental.pallas import tpu as pltpu

NUM_HEADS = 4
ROPE_THETA = 10000.0
EPS = 1e-6
NEG_INF = -1e30


# ----------------------------------------------------------------------------
# Pure per-batch-element math (shared by the Pallas kernel and the JAX ref).
#   x          : (S, H)   f32 activations
#   mask       : (S, S)   f32 additive causal mask (0 / NEG_INF), precomputed
#   cos        : (S, hd)  f32 RoPE cos table, precomputed
#   sin_signed : (S, hd)  f32 RoPE [-sin, sin] table (sign pre-folded)
#   wqkv       : (H, 3H)  bf16 fused QKV (1/sqrt(hd) folded into Q columns)
#   wo         : (H, H)   bf16 output projection (rows head-major)
#   wgu        : (H, 2I)  bf16 fused gate/up
#   wd         : (I, H)   bf16 down projection
# ----------------------------------------------------------------------------
def _layer_math(x, mask, cos, sin_signed, w_ln1, wqkv, wo, w_ln2, wgu, wd,
                *, recip, roll):
    S, H = x.shape
    NH = NUM_HEADS
    hd = H // NH
    hd2 = hd // 2
    I = wgu.shape[1] // 2
    f32 = jnp.float32
    bf16 = jnp.bfloat16

    def rms_norm(t, w):
        var = jnp.mean(t * t, axis=-1, keepdims=True)
        return t * lax.rsqrt(var + EPS) * w

    def rope(t):                                   # t: (S, hd) f32
        # rotate-half = one lane roll (XLU) * signed-sin; sign baked into table.
        return t * cos + roll(t, hd2) * sin_signed

    # ---- attention block ----------------------------------------------------
    residual = x
    xn = rms_norm(x, w_ln1).astype(bf16)                              # (S, H)
    # ONE lane-dense (N = 3H) MXU matmul for the fused QKV projection.
    qkv = jnp.dot(xn, wqkv, preferred_element_type=f32)               # (S, 3H)

    ctx_heads = []
    for h in range(NH):                          # static per-head lane slices
        lo = h * hd
        qh = rope(qkv[:, lo:lo + hd]).astype(bf16)       # scale folded into wq
        kh = rope(qkv[:, H + lo:H + lo + hd]).astype(bf16)
        vh = qkv[:, 2 * H + lo:2 * H + lo + hd].astype(bf16)
        s = lax.dot_general(qh, kh, (((1,), (1,)), ((), ())),
                            preferred_element_type=f32) + mask        # (S, S)
        s = s - jnp.max(s, axis=-1, keepdims=True)
        p = jnp.exp(s)
        p = p * recip(jnp.sum(p, axis=-1, keepdims=True))
        ctx_heads.append(jnp.dot(p.astype(bf16), vh,
                                 preferred_element_type=f32))         # (S, hd)
    # Head-major context slab -> single (S,H)@(H,H) matmul: head reduction is
    # MXU K-accumulation; no (NH,S,H) f32 intermediate, no VPU sum over heads.
    ctx = jnp.concatenate(ctx_heads, axis=-1).astype(bf16)            # (S, H)
    attn = jnp.dot(ctx, wo, preferred_element_type=f32)               # (S, H)
    x = residual + attn

    # ---- MLP block (SwiGLU), fused gate/up -----------------------------------
    residual = x
    xn2 = rms_norm(x, w_ln2).astype(bf16)
    gu = jnp.dot(xn2, wgu, preferred_element_type=f32)                # (S, 2I)
    gate = gu[:, :I]
    up = gu[:, I:]
    act = gate * jax.nn.sigmoid(gate) * up                            # SiLU*up
    mlp = jnp.dot(act.astype(bf16), wd, preferred_element_type=f32)
    return residual + mlp


# ----------------------------------------------------------------------------
# Pallas kernel: one batch element per grid step, full (S, H) slab in VMEM.
# ----------------------------------------------------------------------------
def _decoder_layer_kernel(mask_ref, cos_ref, sin_ref, x_ref,
                          w_ln1_ref, wqkv_ref, wo_ref, w_ln2_ref,
                          wgu_ref, wd_ref, o_ref):
    out = _layer_math(
        x_ref[...].astype(jnp.float32), mask_ref[...], cos_ref[...],
        sin_ref[...], w_ln1_ref[...], wqkv_ref[...], wo_ref[...],
        w_ln2_ref[...], wgu_ref[...], wd_ref[...],
        recip=lambda t: pl.reciprocal(t, approx=True),
        roll=lambda t, s: pltpu.roll(t, shift=s, axis=1))
    o_ref[...] = out.astype(o_ref.dtype)


def _rope_tables(position_ids, seq_len, head_dim):
    """Batch-invariant RoPE tables (cos, signed-sin), computed once host-side."""
    hd2 = head_dim // 2
    pos = position_ids[0, :seq_len].astype(jnp.float32)[:, None]      # (S, 1)
    inv_freq = ROPE_THETA ** (-2.0 * jnp.arange(hd2, dtype=jnp.float32) / head_dim)
    ang = pos * inv_freq[None, :]                                     # (S, hd2)
    cos = jnp.concatenate([jnp.cos(ang), jnp.cos(ang)], axis=-1)      # (S, hd)
    sin = jnp.sin(ang)
    sin_signed = jnp.concatenate([-sin, sin], axis=-1)                # (S, hd)
    return cos, sin_signed


def _causal_mask(seq_len):
    """Additive causal mask, computed once (not rebuilt per grid step)."""
    row = lax.broadcasted_iota(jnp.int32, (seq_len, seq_len), 0)
    col = lax.broadcasted_iota(jnp.int32, (seq_len, seq_len), 1)
    return jnp.where(row >= col, 0.0, NEG_INF).astype(jnp.float32)


def _vmem_limit_bytes():
    """Generation-aware VMEM cap: headroom on v7x (64 MiB), roomy on v5e/v6e."""
    try:
        cap = pltpu.get_tpu_info().vmem_capacity_bytes
    except Exception:
        cap = 128 * 1024 * 1024
    if cap <= 64 * 1024 * 1024:
        return 40 * 1024 * 1024          # v7x
    return 100 * 1024 * 1024             # v5e / v6e


def wrap_layer_forward(x, params, position_ids):
    """WrapLayer.forward: layer(x, position_ids=position_ids[:, :seq_len])[0]."""
    B, S, H = x.shape
    NH = NUM_HEADS
    assert H % NH == 0 and (H // NH) % 2 == 0, "H must split into even head_dim"
    hd = H // NH
    I = params["wd"].shape[0]

    cos, sin_signed = _rope_tables(position_ids, S, hd)
    mask = _causal_mask(S)

    def build_call(single_buffer_consts):
        pmode = pl.Buffered(1) if single_buffer_consts else None

        def const(shape):
            idx = lambda b: (0,) * len(shape)
            if pmode is None:
                return pl.BlockSpec(shape, idx)
            # Grid-invariant block: single-buffer (no pointless 2x VMEM).
            return pl.BlockSpec(shape, idx, pipeline_mode=pmode)

        grid_spec = pltpu.PrefetchScalarGridSpec(
            num_scalar_prefetch=0,
            grid=(B,),
            in_specs=[
                const((S, S)),                                    # causal mask
                const((S, hd)),                                   # cos
                const((S, hd)),                                   # signed sin
                pl.BlockSpec((None, S, H), lambda b: (b, 0, 0)),  # x (per batch)
                const((1, H)),                                    # ln1 weight (f32)
                const((H, 3 * H)),                                # fused QKV  (bf16)
                const((H, H)),                                    # out proj   (bf16)
                const((1, H)),                                    # ln2 weight (f32)
                const((H, 2 * I)),                                # gate/up    (bf16)
                const((I, H)),                                    # down       (bf16)
            ],
            out_specs=pl.BlockSpec((None, S, H), lambda b: (b, 0, 0)),
        )
        return pl.pallas_call(
            _decoder_layer_kernel,
            out_shape=jax.ShapeDtypeStruct((B, S, H), x.dtype),
            grid_spec=grid_spec,
            compiler_params=pltpu.CompilerParams(
                dimension_semantics=("parallel",),
                vmem_limit_bytes=_vmem_limit_bytes()),
        )

    args = (mask, cos, sin_signed, x,
            params["w_ln1"], params["wqkv"], params["wo"], params["w_ln2"],
            params["wgu"], params["wd"])
    try:
        return build_call(True)(*args)
    except Exception:
        # TODO(synk): drop this fallback once pl.Buffered(1) single-buffering of
        # grid-invariant inputs is guaranteed on the deployed jax version.
        return build_call(False)(*args)


def wrap_layer_reference(x, params, position_ids):
    B, S, H = x.shape
    hd = H // NUM_HEADS
    cos, sin_signed = _rope_tables(position_ids, S, hd)
    mask = _causal_mask(S)
    fn = lambda xb: _layer_math(
        xb.astype(jnp.float32), mask, cos, sin_signed,
        params["w_ln1"], params["wqkv"], params["wo"], params["w_ln2"],
        params["wgu"], params["wd"],
        recip=lambda t: 1.0 / t,
        roll=lambda t, s: jnp.roll(t, shift=s, axis=1))
    return jax.vmap(fn)(x).astype(x.dtype)


def init_params(key, hidden, intermediate):
    NH = NUM_HEADS
    hd = hidden // NH
    ks = jax.random.split(key, 7)
    n = lambda k, shp: jax.random.normal(k, shp, jnp.float32) * 0.02
    wq = n(ks[0], (hidden, hidden))
    wk = n(ks[1], (hidden, hidden))
    wv = n(ks[2], (hidden, hidden))
    wo = n(ks[3], (hidden, hidden))
    wg = n(ks[4], (hidden, intermediate))
    wu = n(ks[5], (hidden, intermediate))
    wd = n(ks[6], (intermediate, hidden))

    # Fold the 1/sqrt(head_dim) attention scale into the Q projection weights
    # (free at init; removes an O(NH*S^2) VPU multiply per grid step).
    wq = wq * (1.0 / float(hd) ** 0.5)

    # Fused weight layouts (done once, outside the kernel).
    wqkv = jnp.concatenate([wq, wk, wv], axis=1)        # (H, 3H) head-major cols
    wgu = jnp.concatenate([wg, wu], axis=1)             # (H, 2I)

    bf16 = jnp.bfloat16
    return {
        "w_ln1": jnp.ones((1, hidden), jnp.float32),
        "w_ln2": jnp.ones((1, hidden), jnp.float32),
        "wqkv": wqkv.astype(bf16),
        "wo": wo.astype(bf16),        # (H, H), rows head-major
        "wgu": wgu.astype(bf16),
        "wd": wd.astype(bf16),
    }


if __name__ == "__main__":
    B, S, H, I = 2, 8, 32, 64
    MAX_SEQ_LEN = 16

    key = jax.random.PRNGKey(0)
    k_x, k_p = jax.random.split(key)
    x = jax.random.normal(k_x, (B, S, H), jnp.float32)
    params = init_params(k_p, H, I)

    # WrapLayer's frozen position_ids parameter: arange(max_seq_len)[None, :]
    position_ids = jnp.arange(MAX_SEQ_LEN, dtype=jnp.int32).reshape(1, MAX_SEQ_LEN)

    out = wrap_layer_forward(x, params, position_ids)
    out = jax.block_until_ready(out)

    ref = wrap_layer_reference(x, params, position_ids)
    assert out.shape == (B, S, H)
    assert jnp.allclose(out, ref, atol=2e-3, rtol=2e-3)

    print("KERNEL_OK")
</pallas_src>

<mosaic_0001>
module attributes {stable_mosaic.version = 11 : i64} {
  func.func @_decoder_layer_kernel(%arg0: i32, %arg1: memref<8x8xf32, #tpu.memory_space<vmem>>, %arg2: memref<8x8xf32, #tpu.memory_space<vmem>>, %arg3: memref<8x8xf32, #tpu.memory_space<vmem>>, %arg4: memref<1x8x32xf32, #tpu.memory_space<vmem>>, %arg5: memref<1x32xf32, #tpu.memory_space<vmem>>, %arg6: memref<32x96xbf16, #tpu.memory_space<vmem>>, %arg7: memref<32x32xbf16, #tpu.memory_space<vmem>>, %arg8: memref<1x32xf32, #tpu.memory_space<vmem>>, %arg9: memref<32x128xbf16, #tpu.memory_space<vmem>>, %arg10: memref<64x32xbf16, #tpu.memory_space<vmem>>, %arg11: memref<1x8x32xf32, #tpu.memory_space<vmem>>) attributes {dimension_semantics = [#tpu.dimension_semantics<parallel>], iteration_bounds = array<i64: 2>, scalar_prefetch = 0 : i64, scratch_operands = 0 : i64, tpu.core_type = #tpu.core_type<tc>, window_params = [{pipeline_mode = #tpu.pipeline_mode<synchronous>, transform_indices = @transform_0, window_bounds = array<i64: 8, 8>}, {pipeline_mode = #tpu.pipeline_mode<synchronous>, transform_indices = @transform_1, window_bounds = array<i64: 8, 8>}, {pipeline_mode = #tpu.pipeline_mode<synchronous>, transform_indices = @transform_2, window_bounds = array<i64: 8, 8>}, {transform_indices = @transform_3, window_bounds = array<i64: 1, 8, 32>}, {pipeline_mode = #tpu.pipeline_mode<synchronous>, transform_indices = @transform_4, window_bounds = array<i64: 1, 32>}, {pipeline_mode = #tpu.pipeline_mode<synchronous>, transform_indices = @transform_5, window_bounds = array<i64: 32, 96>}, {pipeline_mode = #tpu.pipeline_mode<synchronous>, transform_indices = @transform_6, window_bounds = array<i64: 32, 32>}, {pipeline_mode = #tpu.pipeline_mode<synchronous>, transform_indices = @transform_7, window_bounds = array<i64: 1, 32>}, {pipeline_mode = #tpu.pipeline_mode<synchronous>, transform_indices = @transform_8, window_bounds = array<i64: 32, 128>}, {pipeline_mode = #tpu.pipeline_mode<synchronous>, transform_indices = @transform_9, window_bounds = array<i64: 64, 32>}, {transform_indices = @transform_10, window_bounds = array<i64: 1, 8, 32>}]} {
    %c0 = arith.constant 0 : index
    %c0_0 = arith.constant 0 : index
    %c0_1 = arith.constant 0 : index
    %0 = vector.load %arg4[%c0, %c0_0, %c0_1] : memref<1x8x32xf32, #tpu.memory_space<vmem>>, vector<1x8x32xf32>
    %1 = vector.shape_cast %0 : vector<1x8x32xf32> to vector<8x32xf32>
    %c0_2 = arith.constant 0 : index
    %c0_3 = arith.constant 0 : index
    %2 = vector.load %arg1[%c0_2, %c0_3] : memref<8x8xf32, #tpu.memory_space<vmem>>, vector<8x8xf32>
    %c0_4 = arith.constant 0 : index
    %c0_5 = arith.constant 0 : index
    %3 = vector.load %arg2[%c0_4, %c0_5] : memref<8x8xf32, #tpu.memory_space<vmem>>, vector<8x8xf32>
    %c0_6 = arith.constant 0 : index
    %c0_7 = arith.constant 0 : index
    %4 = vector.load %arg3[%c0_6, %c0_7] : memref<8x8xf32, #tpu.memory_space<vmem>>, vector<8x8xf32>
    %c0_8 = arith.constant 0 : index
    %c0_9 = arith.constant 0 : index
    %5 = vector.load %arg5[%c0_8, %c0_9] : memref<1x32xf32, #tpu.memory_space<vmem>>, vector<1x32xf32>
    %c0_10 = arith.constant 0 : index
    %c0_11 = arith.constant 0 : index
    %6 = vector.load %arg6[%c0_10, %c0_11] : memref<32x96xbf16, #tpu.memory_space<vmem>>, vector<32x96xbf16>
    %c0_12 = arith.constant 0 : index
    %c0_13 = arith.constant 0 : index
    %7 = vector.load %arg7[%c0_12, %c0_13] : memref<32x32xbf16, #tpu.memory_space<vmem>>, vector<32x32xbf16>
    %c0_14 = arith.constant 0 : index
    %c0_15 = arith.constant 0 : index
    %8 = vector.load %arg8[%c0_14, %c0_15] : memref<1x32xf32, #tpu.memory_space<vmem>>, vector<1x32xf32>
    %c0_16 = arith.constant 0 : index
    %c0_17 = arith.constant 0 : index
    %9 = vector.load %arg9[%c0_16, %c0_17] : memref<32x128xbf16, #tpu.memory_space<vmem>>, vector<32x128xbf16>
    %c0_18 = arith.constant 0 : index
    %c0_19 = arith.constant 0 : index
    %10 = vector.load %arg10[%c0_18, %c0_19] : memref<64x32xbf16, #tpu.memory_space<vmem>>, vector<64x32xbf16>
    %11 = arith.mulf %1, %1 : vector<8x32xf32>
    %cst = arith.constant dense<0.000000e+00> : vector<8xf32>
    %12 = vector.multi_reduction <add>, %11, %cst [1] : vector<8x32xf32> to vector<8xf32>
    %13 = vector.shape_cast %12 : vector<8xf32> to vector<8x1xf32>
    %cst_20 = arith.constant 3.200000e+01 : f32
    %14 = vector.broadcast %cst_20 : f32 to vector<8x1xf32>
    %15 = arith.divf %13, %14 : vector<8x1xf32>
    %cst_21 = arith.constant 9.99999997E-7 : f32
    %16 = vector.broadcast %cst_21 : f32 to vector<8x1xf32>
    %17 = arith.addf %15, %16 : vector<8x1xf32>
    %18 = math.rsqrt %17 : vector<8x1xf32>
    %19 = vector.broadcast %18 : vector<8x1xf32> to vector<8x32xf32>
    %20 = arith.mulf %1, %19 : vector<8x32xf32>
    %21 = vector.broadcast %5 : vector<1x32xf32> to vector<8x32xf32>
    %22 = arith.mulf %20, %21 : vector<8x32xf32>
    %23 = arith.truncf %22 : vector<8x32xf32> to vector<8x32xbf16>
    %cst_22 = arith.constant dense<0.000000e+00> : vector<8x96xf32>
    %24 = tpu.matmul %23, %6, %cst_22 {dimension_numbers = #tpu.dot_dimension_numbers<[1], [0], [0], [1], [0, 0, 1, 1], [], []>} : vector<8x32xbf16>, vector<32x96xbf16>, vector<8x96xf32> -> vector<8x96xf32>
    %25 = vector.extract_strided_slice %24 {offsets = [0, 0], sizes = [8, 8], strides = [1, 1]} : vector<8x96xf32> to vector<8x8xf32>
    %26 = arith.mulf %25, %3 : vector<8x8xf32>
    %c4_i32 = arith.constant 4 : i32
    %27 = tpu.dynamic_rotate %25 by %c4_i32 dim 1 : vector<8x8xf32>, i32 -> vector<8x8xf32>
    %28 = arith.mulf %27, %4 : vector<8x8xf32>
    %29 = arith.addf %26, %28 : vector<8x8xf32>
    %30 = arith.truncf %29 : vector<8x8xf32> to vector<8x8xbf16>
    %31 = vector.extract_strided_slice %24 {offsets = [0, 32], sizes = [8, 8], strides = [1, 1]} : vector<8x96xf32> to vector<8x8xf32>
    %32 = arith.mulf %31, %3 : vector<8x8xf32>
    %c4_i32_23 = arith.constant 4 : i32
    %33 = tpu.dynamic_rotate %31 by %c4_i32_23 dim 1 : vector<8x8xf32>, i32 -> vector<8x8xf32>
    %34 = arith.mulf %33, %4 : vector<8x8xf32>
    %35 = arith.addf %32, %34 : vector<8x8xf32>
    %36 = arith.truncf %35 : vector<8x8xf32> to vector<8x8xbf16>
    %37 = vector.extract_strided_slice %24 {offsets = [0, 64], sizes = [8, 8], strides = [1, 1]} : vector<8x96xf32> to vector<8x8xf32>
    %38 = arith.truncf %37 : vector<8x8xf32> to vector<8x8xbf16>
    %cst_24 = arith.constant dense<0.000000e+00> : vector<8x8xf32>
    %39 = tpu.matmul %30, %36, %cst_24 {dimension_numbers = #tpu.dot_dimension_numbers<[1], [1], [0], [0], [0, 0, 1, 0], [], []>} : vector<8x8xbf16>, vector<8x8xbf16>, vector<8x8xf32> -> vector<8x8xf32>
    %40 = arith.addf %39, %2 : vector<8x8xf32>
    %cst_25 = arith.constant dense<0xFF800000> : vector<8xf32>
    %41 = vector.multi_reduction <maximumf>, %40, %cst_25 [1] : vector<8x8xf32> to vector<8xf32>
    %42 = vector.shape_cast %41 : vector<8xf32> to vector<8x1xf32>
    %43 = vector.broadcast %42 : vector<8x1xf32> to vector<8x8xf32>
    %44 = arith.subf %40, %43 : vector<8x8xf32>
    %45 = math.exp %44 : vector<8x8xf32>
    %cst_26 = arith.constant dense<0.000000e+00> : vector<8xf32>
    %46 = vector.multi_reduction <add>, %45, %cst_26 [1] : vector<8x8xf32> to vector<8xf32>
    %47 = vector.shape_cast %46 : vector<8xf32> to vector<8x1xf32>
    %48 = tpu.reciprocal %47 {approx = true} : vector<8x1xf32> -> vector<8x1xf32>
    %49 = vector.broadcast %48 : vector<8x1xf32> to vector<8x8xf32>
    %50 = arith.mulf %45, %49 : vector<8x8xf32>
    %51 = arith.truncf %50 : vector<8x8xf32> to vector<8x8xbf16>
    %cst_27 = arith.constant dense<0.000000e+00> : vector<8x8xf32>
    %52 = tpu.matmul %51, %38, %cst_27 {dimension_numbers = #tpu.dot_dimension_numbers<[1], [0], [0], [1], [0, 0, 1, 1], [], []>} : vector<8x8xbf16>, vector<8x8xbf16>, vector<8x8xf32> -> vector<8x8xf32>
    %53 = vector.extract_strided_slice %24 {offsets = [0, 8], sizes = [8, 8], strides = [1, 1]} : vector<8x96xf32> to vector<8x8xf32>
    %54 = arith.mulf %53, %3 : vector<8x8xf32>
    %c4_i32_28 = arith.constant 4 : i32
    %55 = tpu.dynamic_rotate %53 by %c4_i32_28 dim 1 : vector<8x8xf32>, i32 -> vector<8x8xf32>
    %56 = arith.mulf %55, %4 : vector<8x8xf32>
    %57 = arith.addf %54, %56 : vector<8x8xf32>
    %58 = arith.truncf %57 : vector<8x8xf32> to vector<8x8xbf16>
    %59 = vector.extract_strided_slice %24 {offsets = [0, 40], sizes = [8, 8], strides = [1, 1]} : vector<8x96xf32> to vector<8x8xf32>
    %60 = arith.mulf %59, %3 : vector<8x8xf32>
    %c4_i32_29 = arith.constant 4 : i32
    %61 = tpu.dynamic_rotate %59 by %c4_i32_29 dim 1 : vector<8x8xf32>, i32 -> vector<8x8xf32>
    %62 = arith.mulf %61, %4 : vector<8x8xf32>
    %63 = arith.addf %60, %62 : vector<8x8xf32>
    %64 = arith.truncf %63 : vector<8x8xf32> to vector<8x8xbf16>
    %65 = vector.extract_strided_slice %24 {offsets = [0, 72], sizes = [8, 8], strides = [1, 1]} : vector<8x96xf32> to vector<8x8xf32>
    %66 = arith.truncf %65 : vector<8x8xf32> to vector<8x8xbf16>
    %cst_30 = arith.constant dense<0.000000e+00> : vector<8x8xf32>
    %67 = tpu.matmul %58, %64, %cst_30 {dimension_numbers = #tpu.dot_dimension_numbers<[1], [1], [0], [0], [0, 0, 1, 0], [], []>} : vector<8x8xbf16>, vector<8x8xbf16>, vector<8x8xf32> -> vector<8x8xf32>
    %68 = arith.addf %67, %2 : vector<8x8xf32>
    %cst_31 = arith.constant dense<0xFF800000> : vector<8xf32>
    %69 = vector.multi_reduction <maximumf>, %68, %cst_31 [1] : vector<8x8xf32> to vector<8xf32>
    %70 = vector.shape_cast %69 : vector<8xf32> to vector<8x1xf32>
    %71 = vector.broadcast %70 : vector<8x1xf32> to vector<8x8xf32>
    %72 = arith.subf %68, %71 : vector<8x8xf32>
    %73 = math.exp %72 : vector<8x8xf32>
    %cst_32 = arith.constant dense<0.000000e+00> : vector<8xf32>
    %74 = vector.multi_reduction <add>, %73, %cst_32 [1] : vector<8x8xf32> to vector<8xf32>
    %75 = vector.shape_cast %74 : vector<8xf32> to vector<8x1xf32>
    %76 = tpu.reciprocal %75 {approx = true} : vector<8x1xf32> -> vector<8x1xf32>
    %77 = vector.broadcast %76 : vector<8x1xf32> to vector<8x8xf32>
    %78 = arith.mulf %73, %77 : vector<8x8xf32>
    %79 = arith.truncf %78 : vector<8x8xf32> to vector<8x8xbf16>
    %cst_33 = arith.constant dense<0.000000e+00> : vector<8x8xf32>
    %80 = tpu.matmul %79, %66, %cst_33 {dimension_numbers = #tpu.dot_dimension_numbers<[1], [0], [0], [1], [0, 0, 1, 1], [], []>} : vector<8x8xbf16>, vector<8x8xbf16>, vector<8x8xf32> -> vector<8x8xf32>
    %81 = vector.extract_strided_slice %24 {offsets = [0, 16], sizes = [8, 8], strides = [1, 1]} : vector<8x96xf32> to vector<8x8xf32>
    %82 = arith.mulf %81, %3 : vector<8x8xf32>
    %c4_i32_34 = arith.constant 4 : i32
    %83 = tpu.dynamic_rotate %81 by %c4_i32_34 dim 1 : vector<8x8xf32>, i32 -> vector<8x8xf32>
    %84 = arith.mulf %83, %4 : vector<8x8xf32>
    %85 = arith.addf %82, %84 : vector<8x8xf32>
    %86 = arith.truncf %85 : vector<8x8xf32> to vector<8x8xbf16>
    %87 = vector.extract_strided_slice %24 {offsets = [0, 48], sizes = [8, 8], strides = [1, 1]} : vector<8x96xf32> to vector<8x8xf32>
    %88 = arith.mulf %87, %3 : vector<8x8xf32>
    %c4_i32_35 = arith.constant 4 : i32
    %89 = tpu.dynamic_rotate %87 by %c4_i32_35 dim 1 : vector<8x8xf32>, i32 -> vector<8x8xf32>
    %90 = arith.mulf %89, %4 : vector<8x8xf32>
    %91 = arith.addf %88, %90 : vector<8x8xf32>
    %92 = arith.truncf %91 : vector<8x8xf32> to vector<8x8xbf16>
    %93 = vector.extract_strided_slice %24 {offsets = [0, 80], sizes = [8, 8], strides = [1, 1]} : vector<8x96xf32> to vector<8x8xf32>
    %94 = arith.truncf %93 : vector<8x8xf32> to vector<8x8xbf16>
    %cst_36 = arith.constant dense<0.000000e+00> : vector<8x8xf32>
    %95 = tpu.matmul %86, %92, %cst_36 {dimension_numbers = #tpu.dot_dimension_numbers<[1], [1], [0], [0], [0, 0, 1, 0], [], []>} : vector<8x8xbf16>, vector<8x8xbf16>, vector<8x8xf32> -> vector<8x8xf32>
    %96 = arith.addf %95, %2 : vector<8x8xf32>
    %cst_37 = arith.constant dense<0xFF800000> : vector<8xf32>
    %97 = vector.multi_reduction <maximumf>, %96, %cst_37 [1] : vector<8x8xf32> to vector<8xf32>
    %98 = vector.shape_cast %97 : vector<8xf32> to vector<8x1xf32>
    %99 = vector.broadcast %98 : vector<8x1xf32> to vector<8x8xf32>
    %100 = arith.subf %96, %99 : vector<8x8xf32>
    %101 = math.exp %100 : vector<8x8xf32>
    %cst_38 = arith.constant dense<0.000000e+00> : vector<8xf32>
    %102 = vector.multi_reduction <add>, %101, %cst_38 [1] : vector<8x8xf32> to vector<8xf32>
    %103 = vector.shape_cast %102 : vector<8xf32> to vector<8x1xf32>
    %104 = tpu.reciprocal %103 {approx = true} : vector<8x1xf32> -> vector<8x1xf32>
    %105 = vector.broadcast %104 : vector<8x1xf32> to vector<8x8xf32>
    %106 = arith.mulf %101, %105 : vector<8x8xf32>
    %107 = arith.truncf %106 : vector<8x8xf32> to vector<8x8xbf16>
    %cst_39 = arith.constant dense<0.000000e+00> : vector<8x8xf32>
    %108 = tpu.matmul %107, %94, %cst_39 {dimension_numbers = #tpu.dot_dimension_numbers<[1], [0], [0], [1], [0, 0, 1, 1], [], []>} : vector<8x8xbf16>, vector<8x8xbf16>, vector<8x8xf32> -> vector<8x8xf32>
    %109 = vector.extract_strided_slice %24 {offsets = [0, 24], sizes = [8, 8], strides = [1, 1]} : vector<8x96xf32> to vector<8x8xf32>
    %110 = arith.mulf %109, %3 : vector<8x8xf32>
    %c4_i32_40 = arith.constant 4 : i32
    %111 = tpu.dynamic_rotate %109 by %c4_i32_40 dim 1 : vector<8x8xf32>, i32 -> vector<8x8xf32>
    %112 = arith.mulf %111, %4 : vector<8x8xf32>
    %113 = arith.addf %110, %112 : vector<8x8xf32>
    %114 = arith.truncf %113 : vector<8x8xf32> to vector<8x8xbf16>
    %115 = vector.extract_strided_slice %24 {offsets = [0, 56], sizes = [8, 8], strides = [1, 1]} : vector<8x96xf32> to vector<8x8xf32>
    %116 = arith.mulf %115, %3 : vector<8x8xf32>
    %c4_i32_41 = arith.constant 4 : i32
    %117 = tpu.dynamic_rotate %115 by %c4_i32_41 dim 1 : vector<8x8xf32>, i32 -> vector<8x8xf32>
    %118 = arith.mulf %117, %4 : vector<8x8xf32>
    %119 = arith.addf %116, %118 : vector<8x8xf32>
    %120 = arith.truncf %119 : vector<8x8xf32> to vector<8x8xbf16>
    %121 = vector.extract_strided_slice %24 {offsets = [0, 88], sizes = [8, 8], strides = [1, 1]} : vector<8x96xf32> to vector<8x8xf32>
    %122 = arith.truncf %121 : vector<8x8xf32> to vector<8x8xbf16>
    %cst_42 = arith.constant dense<0.000000e+00> : vector<8x8xf32>
    %123 = tpu.matmul %114, %120, %cst_42 {dimension_numbers = #tpu.dot_dimension_numbers<[1], [1], [0], [0], [0, 0, 1, 0], [], []>} : vector<8x8xbf16>, vector<8x8xbf16>, vector<8x8xf32> -> vector<8x8xf32>
    %124 = arith.addf %123, %2 : vector<8x8xf32>
    %cst_43 = arith.constant dense<0xFF800000> : vector<8xf32>
    %125 = vector.multi_reduction <maximumf>, %124, %cst_43 [1] : vector<8x8xf32> to vector<8xf32>
    %126 = vector.shape_cast %125 : vector<8xf32> to vector<8x1xf32>
    %127 = vector.broadcast %126 : vector<8x1xf32> to vector<8x8xf32>
    %128 = arith.subf %124, %127 : vector<8x8xf32>
    %129 = math.exp %128 : vector<8x8xf32>
    %cst_44 = arith.constant dense<0.000000e+00> : vector<8xf32>
    %130 = vector.multi_reduction <add>, %129, %cst_44 [1] : vector<8x8xf32> to vector<8xf32>
    %131 = vector.shape_cast %130 : vector<8xf32> to vector<8x1xf32>
    %132 = tpu.reciprocal %131 {approx = true} : vector<8x1xf32> -> vector<8x1xf32>
    %133 = vector.broadcast %132 : vector<8x1xf32> to vector<8x8xf32>
    %134 = arith.mulf %129, %133 : vector<8x8xf32>
    %135 = arith.truncf %134 : vector<8x8xf32> to vector<8x8xbf16>
    %cst_45 = arith.constant dense<0.000000e+00> : vector<8x8xf32>
    %136 = tpu.matmul %135, %122, %cst_45 {dimension_numbers = #tpu.dot_dimension_numbers<[1], [0], [0], [1], [0, 0, 1, 1], [], []>} : vector<8x8xbf16>, vector<8x8xbf16>, vector<8x8xf32> -> vector<8x8xf32>
    %137 = tpu.concatenate %52, %80, %108, %136 in 1 : vector<8x8xf32>, vector<8x8xf32>, vector<8x8xf32>, vector<8x8xf32> -> vector<8x32xf32>
    %138 = arith.truncf %137 : vector<8x32xf32> to vector<8x32xbf16>
    %cst_46 = arith.constant dense<0.000000e+00> : vector<8x32xf32>
    %139 = tpu.matmul %138, %7, %cst_46 {dimension_numbers = #tpu.dot_dimension_numbers<[1], [0], [0], [1], [0, 0, 1, 1], [], []>} : vector<8x32xbf16>, vector<32x32xbf16>, vector<8x32xf32> -> vector<8x32xf32>
    %140 = arith.addf %1, %139 : vector<8x32xf32>
    %141 = arith.mulf %140, %140 : vector<8x32xf32>
    %cst_47 = arith.constant dense<0.000000e+00> : vector<8xf32>
    %142 = vector.multi_reduction <add>, %141, %cst_47 [1] : vector<8x32xf32> to vector<8xf32>
    %143 = vector.shape_cast %142 : vector<8xf32> to vector<8x1xf32>
    %cst_48 = arith.constant 3.200000e+01 : f32
    %144 = vector.broadcast %cst_48 : f32 to vector<8x1xf32>
    %145 = arith.divf %143, %144 : vector<8x1xf32>
    %cst_49 = arith.constant 9.99999997E-7 : f32
    %146 = vector.broadcast %cst_49 : f32 to vector<8x1xf32>
    %147 = arith.addf %145, %146 : vector<8x1xf32>
    %148 = math.rsqrt %147 : vector<8x1xf32>
    %149 = vector.broadcast %148 : vector<8x1xf32> to vector<8x32xf32>
    %150 = arith.mulf %140, %149 : vector<8x32xf32>
    %151 = vector.broadcast %8 : vector<1x32xf32> to vector<8x32xf32>
    %152 = arith.mulf %150, %151 : vector<8x32xf32>
    %153 = arith.truncf %152 : vector<8x32xf32> to vector<8x32xbf16>
    %cst_50 = arith.constant dense<0.000000e+00> : vector<8x128xf32>
    %154 = tpu.matmul %153, %9, %cst_50 {dimension_numbers = #tpu.dot_dimension_numbers<[1], [0], [0], [1], [0, 0, 1, 1], [], []>} : vector<8x32xbf16>, vector<32x128xbf16>, vector<8x128xf32> -> vector<8x128xf32>
    %155 = vector.extract_strided_slice %154 {offsets = [0, 0], sizes = [8, 64], strides = [1, 1]} : vector<8x128xf32> to vector<8x64xf32>
    %156 = vector.extract_strided_slice %154 {offsets = [0, 64], sizes = [8, 64], strides = [1, 1]} : vector<8x128xf32> to vector<8x64xf32>
    %157 = arith.negf %155 : vector<8x64xf32>
    %158 = math.exp %157 : vector<8x64xf32>
    %cst_51 = arith.constant 1.000000e+00 : f32
    %159 = vector.broadcast %cst_51 : f32 to vector<8x64xf32>
    %160 = arith.addf %159, %158 : vector<8x64xf32>
    %161 = arith.divf %159, %160 : vector<8x64xf32>
    %162 = arith.mulf %155, %161 : vector<8x64xf32>
    %163 = arith.mulf %162, %156 : vector<8x64xf32>
    %164 = arith.truncf %163 : vector<8x64xf32> to vector<8x64xbf16>
    %cst_52 = arith.constant dense<0.000000e+00> : vector<8x32xf32>
    %165 = tpu.matmul %164, %10, %cst_52 {dimension_numbers = #tpu.dot_dimension_numbers<[1], [0], [0], [1], [0, 0, 1, 1], [], []>} : vector<8x64xbf16>, vector<64x32xbf16>, vector<8x32xf32> -> vector<8x32xf32>
    %166 = arith.addf %140, %165 : vector<8x32xf32>
    %c0_53 = arith.constant 0 : index
    %c0_54 = arith.constant 0 : index
    %c0_55 = arith.constant 0 : index
    %167 = vector.load %arg11[%c0_53, %c0_54, %c0_55] : memref<1x8x32xf32, #tpu.memory_space<vmem>>, vector<1x8x32xf32>
    %168 = vector.shape_cast %167 : vector<1x8x32xf32> to vector<8x32xf32>
    %169 = vector.shape_cast %166 : vector<8x32xf32> to vector<1x8x32xf32>
    tpu.vector_store %arg11[%c0_53, %c0_54, %c0_55], %169 {strides = array<i32>} : memref<1x8x32xf32, #tpu.memory_space<vmem>>, vector<1x8x32xf32>,
    return
  }
  func.func @transform_0(%arg0: i32) -> (i32, i32) {
    %c0_i32 = arith.constant 0 : i32
    %c0_i32_0 = arith.constant 0 : i32
    %c0_i32_1 = arith.constant 0 : i32
    return %c0_i32, %c0_i32_0 : i32, i32
  }
  func.func @transform_1(%arg0: i32) -> (i32, i32) {
    %c0_i32 = arith.constant 0 : i32
    %c0_i32_0 = arith.constant 0 : i32
    %c0_i32_1 = arith.constant 0 : i32
    return %c0_i32, %c0_i32_0 : i32, i32
  }
  func.func @transform_2(%arg0: i32) -> (i32, i32) {
    %c0_i32 = arith.constant 0 : i32
    %c0_i32_0 = arith.constant 0 : i32
    %c0_i32_1 = arith.constant 0 : i32
    return %c0_i32, %c0_i32_0 : i32, i32
  }
  func.func @transform_3(%arg0: i32) -> (i32, i32, i32) {
    %c0_i32 = arith.constant 0 : i32
    %c0_i32_0 = arith.constant 0 : i32
    %c0_i32_1 = arith.constant 0 : i32
    return %arg0, %c0_i32, %c0_i32_0 : i32, i32, i32
  }
  func.func @transform_4(%arg0: i32) -> (i32, i32) {
    %c0_i32 = arith.constant 0 : i32
    %c0_i32_0 = arith.constant 0 : i32
    %c0_i32_1 = arith.constant 0 : i32
    return %c0_i32, %c0_i32_0 : i32, i32
  }
  func.func @transform_5(%arg0: i32) -> (i32, i32) {
    %c0_i32 = arith.constant 0 : i32
    %c0_i32_0 = arith.constant 0 : i32
    %c0_i32_1 = arith.constant 0 : i32
    return %c0_i32, %c0_i32_0 : i32, i32
  }
  func.func @transform_6(%arg0: i32) -> (i32, i32) {
    %c0_i32 = arith.constant 0 : i32
    %c0_i32_0 = arith.constant 0 : i32
    %c0_i32_1 = arith.constant 0 : i32
    return %c0_i32, %c0_i32_0 : i32, i32
  }
  func.func @transform_7(%arg0: i32) -> (i32, i32) {
    %c0_i32 = arith.constant 0 : i32
    %c0_i32_0 = arith.constant 0 : i32
    %c0_i32_1 = arith.constant 0 : i32
    return %c0_i32, %c0_i32_0 : i32, i32
  }
  func.func @transform_8(%arg0: i32) -> (i32, i32) {
    %c0_i32 = arith.constant 0 : i32
    %c0_i32_0 = arith.constant 0 : i32
    %c0_i32_1 = arith.constant 0 : i32
    return %c0_i32, %c0_i32_0 : i32, i32
  }
  func.func @transform_9(%arg0: i32) -> (i32, i32) {
    %c0_i32 = arith.constant 0 : i32
    %c0_i32_0 = arith.constant 0 : i32
    %c0_i32_1 = arith.constant 0 : i32
    return %c0_i32, %c0_i32_0 : i32, i32
  }
  func.func @transform_10(%arg0: i32) -> (i32, i32, i32) {
    %c0_i32 = arith.constant 0 : i32
    %c0_i32_0 = arith.constant 0 : i32
    %c0_i32_1 = arith.constant 0 : i32
    return %arg0, %c0_i32, %c0_i32_0 : i32, i32, i32
  }
}

module attributes {stable_mosaic.version = 11 : i64} {
  func.func @_decoder_layer_kernel(%arg0: i32, %arg1: memref<8x8xf32, #tpu.memory_space<vmem>>, %arg2: memref<8x8xf32, #tpu.memory_space<vmem>>, %arg3: memref<8x8xf32, #tpu.memory_space<vmem>>, %arg4: memref<1x8x32xf32, #tpu.memory_space<vmem>>, %arg5: memref<1x32xf32, #tpu.memory_space<vmem>>, %arg6: memref<32x96xbf16, #tpu.memory_space<vmem>>, %arg7: memref<32x32xbf16, #tpu.memory_space<vmem>>, %arg8: memref<1x32xf32, #tpu.memory_space<vmem>>, %arg9: memref<32x128xbf16, #tpu.memory_space<vmem>>, %arg10: memref<64x32xbf16, #tpu.memory_space<vmem>>, %arg11: memref<1x8x32xf32, #tpu.memory_space<vmem>>) attributes {dimension_semantics = [#tpu.dimension_semantics<parallel>], iteration_bounds = array<i64: 2>, scalar_prefetch = 0 : i64, scratch_operands = 0 : i64, tpu.core_type = #tpu.core_type<tc>, window_params = [{pipeline_mode = #tpu.pipeline_mode<synchronous>, transform_indices = @transform_0, window_bounds = array<i64: 8, 8>}, {pipeline_mode = #tpu.pipeline_mode<synchronous>, transform_indices = @transform_1, window_bounds = array<i64: 8, 8>}, {pipeline_mode = #tpu.pipeline_mode<synchronous>, transform_indices = @transform_2, window_bounds = array<i64: 8, 8>}, {transform_indices = @transform_3, window_bounds = array<i64: 1, 8, 32>}, {pipeline_mode = #tpu.pipeline_mode<synchronous>, transform_indices = @transform_4, window_bounds = array<i64: 1, 32>}, {pipeline_mode = #tpu.pipeline_mode<synchronous>, transform_indices = @transform_5, window_bounds = array<i64: 32, 96>}, {pipeline_mode = #tpu.pipeline_mode<synchronous>, transform_indices = @transform_6, window_bounds = array<i64: 32, 32>}, {pipeline_mode = #tpu.pipeline_mode<synchronous>, transform_indices = @transform_7, window_bounds = array<i64: 1, 32>}, {pipeline_mode = #tpu.pipeline_mode<synchronous>, transform_indices = @transform_8, window_bounds = array<i64: 32, 128>}, {pipeline_mode = #tpu.pipeline_mode<synchronous>, transform_indices = @transform_9, window_bounds = array<i64: 64, 32>}, {transform_indices = @transform_10, window_bounds = array<i64: 1, 8, 32>}]} {
    %c0 = arith.constant 0 : index
    %c0_0 = arith.constant 0 : index
    %c0_1 = arith.constant 0 : index
    %0 = vector.load %arg4[%c0, %c0_0, %c0_1] : memref<1x8x32xf32, #tpu.memory_space<vmem>>, vector<1x8x32xf32>
    %1 = vector.shape_cast %0 : vector<1x8x32xf32> to vector<8x32xf32>
    %c0_2 = arith.constant 0 : index
    %c0_3 = arith.constant 0 : index
    %2 = vector.load %arg1[%c0_2, %c0_3] : memref<8x8xf32, #tpu.memory_space<vmem>>, vector<8x8xf32>
    %c0_4 = arith.constant 0 : index
    %c0_5 = arith.constant 0 : index
    %3 = vector.load %arg2[%c0_4, %c0_5] : memref<8x8xf32, #tpu.memory_space<vmem>>, vector<8x8xf32>
    %c0_6 = arith.constant 0 : index
    %c0_7 = arith.constant 0 : index
    %4 = vector.load %arg3[%c0_6, %c0_7] : memref<8x8xf32, #tpu.memory_space<vmem>>, vector<8x8xf32>
    %c0_8 = arith.constant 0 : index
    %c0_9 = arith.constant 0 : index
    %5 = vector.load %arg5[%c0_8, %c0_9] : memref<1x32xf32, #tpu.memory_space<vmem>>, vector<1x32xf32>
    %c0_10 = arith.constant 0 : index
    %c0_11 = arith.constant 0 : index
    %6 = vector.load %arg6[%c0_10, %c0_11] : memref<32x96xbf16, #tpu.memory_space<vmem>>, vector<32x96xbf16>
    %c0_12 = arith.constant 0 : index
    %c0_13 = arith.constant 0 : index
    %7 = vector.load %arg7[%c0_12, %c0_13] : memref<32x32xbf16, #tpu.memory_space<vmem>>, vector<32x32xbf16>
    %c0_14 = arith.constant 0 : index
    %c0_15 = arith.constant 0 : index
    %8 = vector.load %arg8[%c0_14, %c0_15] : memref<1x32xf32, #tpu.memory_space<vmem>>, vector<1x32xf32>
    %c0_16 = arith.constant 0 : index
    %c0_17 = arith.constant 0 : index
    %9 = vector.load %arg9[%c0_16, %c0_17] : memref<32x128xbf16, #tpu.memory_space<vmem>>, vector<32x128xbf16>
    %c0_18 = arith.constant 0 : index
    %c0_19 = arith.constant 0 : index
    %10 = vector.load %arg10[%c0_18, %c0_19] : memref<64x32xbf16, #tpu.memory_space<vmem>>, vector<64x32xbf16>
    %11 = arith.mulf %1, %1 : vector<8x32xf32>
    %cst = arith.constant dense<0.000000e+00> : vector<8xf32>
    %12 = vector.multi_reduction <add>, %11, %cst [1] : vector<8x32xf32> to vector<8xf32>
    %13 = vector.shape_cast %12 : vector<8xf32> to vector<8x1xf32>
    %cst_20 = arith.constant 3.200000e+01 : f32
    %14 = vector.broadcast %cst_20 : f32 to vector<8x1xf32>
    %15 = arith.divf %13, %14 : vector<8x1xf32>
    %cst_21 = arith.constant 9.99999997E-7 : f32
    %16 = vector.broadcast %cst_21 : f32 to vector<8x1xf32>
    %17 = arith.addf %15, %16 : vector<8x1xf32>
    %18 = math.rsqrt %17 : vector<8x1xf32>
    %19 = vector.broadcast %18 : vector<8x1xf32> to vector<8x32xf32>
    %20 = arith.mulf %1, %19 : vector<8x32xf32>
    %21 = vector.broadcast %5 : vector<1x32xf32> to vector<8x32xf32>
    %22 = arith.mulf %20, %21 : vector<8x32xf32>
    %23 = arith.truncf %22 : vector<8x32xf32> to vector<8x32xbf16>
    %cst_22 = arith.constant dense<0.000000e+00> : vector<8x96xf32>
    %24 = tpu.matmul %23, %6, %cst_22 {dimension_numbers = #tpu.dot_dimension_numbers<[1], [0], [0], [1], [0, 0, 1, 1], [], []>} : vector<8x32xbf16>, vector<32x96xbf16>, vector<8x96xf32> -> vector<8x96xf32>
    %25 = vector.extract_strided_slice %24 {offsets = [0, 0], sizes = [8, 8], strides = [1, 1]} : vector<8x96xf32> to vector<8x8xf32>
    %26 = arith.mulf %25, %3 : vector<8x8xf32>
    %c4_i32 = arith.constant 4 : i32
    %27 = tpu.dynamic_rotate %25 by %c4_i32 dim 1 : vector<8x8xf32>, i32 -> vector<8x8xf32>
    %28 = arith.mulf %27, %4 : vector<8x8xf32>
    %29 = arith.addf %26, %28 : vector<8x8xf32>
    %30 = arith.truncf %29 : vector<8x8xf32> to vector<8x8xbf16>
    %31 = vector.extract_strided_slice %24 {offsets = [0, 32], sizes = [8, 8], strides = [1, 1]} : vector<8x96xf32> to vector<8x8xf32>
    %32 = arith.mulf %31, %3 : vector<8x8xf32>
    %c4_i32_23 = arith.constant 4 : i32
    %33 = tpu.dynamic_rotate %31 by %c4_i32_23 dim 1 : vector<8x8xf32>, i32 -> vector<8x8xf32>
    %34 = arith.mulf %33, %4 : vector<8x8xf32>
    %35 = arith.addf %32, %34 : vector<8x8xf32>
    %36 = arith.truncf %35 : vector<8x8xf32> to vector<8x8xbf16>
    %37 = vector.extract_strided_slice %24 {offsets = [0, 64], sizes = [8, 8], strides = [1, 1]} : vector<8x96xf32> to vector<8x8xf32>
    %38 = arith.truncf %37 : vector<8x8xf32> to vector<8x8xbf16>
    %cst_24 = arith.constant dense<0.000000e+00> : vector<8x8xf32>
    %39 = tpu.matmul %30, %36, %cst_24 {dimension_numbers = #tpu.dot_dimension_numbers<[1], [1], [0], [0], [0, 0, 1, 0], [], []>} : vector<8x8xbf16>, vector<8x8xbf16>, vector<8x8xf32> -> vector<8x8xf32>
    %40 = arith.addf %39, %2 : vector<8x8xf32>
    %cst_25 = arith.constant dense<0xFF800000> : vector<8xf32>
    %41 = vector.multi_reduction <maximumf>, %40, %cst_25 [1] : vector<8x8xf32> to vector<8xf32>
    %42 = vector.shape_cast %41 : vector<8xf32> to vector<8x1xf32>
    %43 = vector.broadcast %42 : vector<8x1xf32> to vector<8x8xf32>
    %44 = arith.subf %40, %43 : vector<8x8xf32>
    %45 = math.exp %44 : vector<8x8xf32>
    %cst_26 = arith.constant dense<0.000000e+00> : vector<8xf32>
    %46 = vector.multi_reduction <add>, %45, %cst_26 [1] : vector<8x8xf32> to vector<8xf32>
    %47 = vector.shape_cast %46 : vector<8xf32> to vector<8x1xf32>
    %48 = tpu.reciprocal %47 {approx = true} : vector<8x1xf32> -> vector<8x1xf32>
    %49 = vector.broadcast %48 : vector<8x1xf32> to vector<8x8xf32>
    %50 = arith.mulf %45, %49 : vector<8x8xf32>
    %51 = arith.truncf %50 : vector<8x8xf32> to vector<8x8xbf16>
    %cst_27 = arith.constant dense<0.000000e+00> : vector<8x8xf32>
    %52 = tpu.matmul %51, %38, %cst_27 {dimension_numbers = #tpu.dot_dimension_numbers<[1], [0], [0], [1], [0, 0, 1, 1], [], []>} : vector<8x8xbf16>, vector<8x8xbf16>, vector<8x8xf32> -> vector<8x8xf32>
    %53 = vector.extract_strided_slice %24 {offsets = [0, 8], sizes = [8, 8], strides = [1, 1]} : vector<8x96xf32> to vector<8x8xf32>
    %54 = arith.mulf %53, %3 : vector<8x8xf32>
    %c4_i32_28 = arith.constant 4 : i32
    %55 = tpu.dynamic_rotate %53 by %c4_i32_28 dim 1 : vector<8x8xf32>, i32 -> vector<8x8xf32>
    %56 = arith.mulf %55, %4 : vector<8x8xf32>
    %57 = arith.addf %54, %56 : vector<8x8xf32>
    %58 = arith.truncf %57 : vector<8x8xf32> to vector<8x8xbf16>
    %59 = vector.extract_strided_slice %24 {offsets = [0, 40], sizes = [8, 8], strides = [1, 1]} : vector<8x96xf32> to vector<8x8xf32>
    %60 = arith.mulf %59, %3 : vector<8x8xf32>
    %c4_i32_29 = arith.constant 4 : i32
    %61 = tpu.dynamic_rotate %59 by %c4_i32_29 dim 1 : vector<8x8xf32>, i32 -> vector<8x8xf32>
    %62 = arith.mulf %61, %4 : vector<8x8xf32>
    %63 = arith.addf %60, %62 : vector<8x8xf32>
    %64 = arith.truncf %63 : vector<8x8xf32> to vector<8x8xbf16>
    %65 = vector.extract_strided_slice %24 {offsets = [0, 72], sizes = [8, 8], strides = [1, 1]} : vector<8x96xf32> to vector<8x8xf32>
    %66 = arith.truncf %65 : vector<8x8xf32> to vector<8x8xbf16>
    %cst_30 = arith.constant dense<0.000000e+00> : vector<8x8xf32>
    %67 = tpu.matmul %58, %64, %cst_30 {dimension_numbers = #tpu.dot_dimension_numbers<[1], [1], [0], [0], [0, 0, 1, 0], [], []>} : vector<8x8xbf16>, vector<8x8xbf16>, vector<8x8xf32> -> vector<8x8xf32>
    %68 = arith.addf %67, %2 : vector<8x8xf32>
    %cst_31 = arith.constant dense<0xFF800000> : vector<8xf32>
    %69 = vector.multi_reduction <maximumf>, %68, %cst_31 [1] : vector<8x8xf32> to vector<8xf32>
    %70 = vector.shape_cast %69 : vector<8xf32> to vector<8x1xf32>
    %71 = vector.broadcast %70 : vector<8x1xf32> to vector<8x8xf32>
    %72 = arith.subf %68, %71 : vector<8x8xf32>
    %73 = math.exp %72 : vector<8x8xf32>
    %cst_32 = arith.constant dense<0.000000e+00> : vector<8xf32>
    %74 = vector.multi_reduction <add>, %73, %cst_32 [1] : vector<8x8xf32> to vector<8xf32>
    %75 = vector.shape_cast %74 : vector<8xf32> to vector<8x1xf32>
    %76 = tpu.reciprocal %75 {approx = true} : vector<8x1xf32> -> vector<8x1xf32>
    %77 = vector.broadcast %76 : vector<8x1xf32> to vector<8x8xf32>
    %78 = arith.mulf %73, %77 : vector<8x8xf32>
    %79 = arith.truncf %78 : vector<8x8xf32> to vector<8x8xbf16>
    %cst_33 = arith.constant dense<0.000000e+00> : vector<8x8xf32>
    %80 = tpu.matmul %79, %66, %cst_33 {dimension_numbers = #tpu.dot_dimension_numbers<[1], [0], [0], [1], [0, 0, 1, 1], [], []>} : vector<8x8xbf16>, vector<8x8xbf16>, vector<8x8xf32> -> vector<8x8xf32>
    %81 = vector.extract_strided_slice %24 {offsets = [0, 16], sizes = [8, 8], strides = [1, 1]} : vector<8x96xf32> to vector<8x8xf32>
    %82 = arith.mulf %81, %3 : vector<8x8xf32>
    %c4_i32_34 = arith.constant 4 : i32
    %83 = tpu.dynamic_rotate %81 by %c4_i32_34 dim 1 : vector<8x8xf32>, i32 -> vector<8x8xf32>
    %84 = arith.mulf %83, %4 : vector<8x8xf32>
    %85 = arith.addf %82, %84 : vector<8x8xf32>
    %86 = arith.truncf %85 : vector<8x8xf32> to vector<8x8xbf16>
    %87 = vector.extract_strided_slice %24 {offsets = [0, 48], sizes = [8, 8], strides = [1, 1]} : vector<8x96xf32> to vector<8x8xf32>
    %88 = arith.mulf %87, %3 : vector<8x8xf32>
    %c4_i32_35 = arith.constant 4 : i32
    %89 = tpu.dynamic_rotate %87 by %c4_i32_35 dim 1 : vector<8x8xf32>, i32 -> vector<8x8xf32>
    %90 = arith.mulf %89, %4 : vector<8x8xf32>
    %91 = arith.addf %88, %90 : vector<8x8xf32>
    %92 = arith.truncf %91 : vector<8x8xf32> to vector<8x8xbf16>
    %93 = vector.extract_strided_slice %24 {offsets = [0, 80], sizes = [8, 8], strides = [1, 1]} : vector<8x96xf32> to vector<8x8xf32>
    %94 = arith.truncf %93 : vector<8x8xf32> to vector<8x8xbf16>
    %cst_36 = arith.constant dense<0.000000e+00> : vector<8x8xf32>
    %95 = tpu.matmul %86, %92, %cst_36 {dimension_numbers = #tpu.dot_dimension_numbers<[1], [1], [0], [0], [0, 0, 1, 0], [], []>} : vector<8x8xbf16>, vector<8x8xbf16>, vector<8x8xf32> -> vector<8x8xf32>
    %96 = arith.addf %95, %2 : vector<8x8xf32>
    %cst_37 = arith.constant dense<0xFF800000> : vector<8xf32>
    %97 = vector.multi_reduction <maximumf>, %96, %cst_37 [1] : vector<8x8xf32> to vector<8xf32>
    %98 = vector.shape_cast %97 : vector<8xf32> to vector<8x1xf32>
    %99 = vector.broadcast %98 : vector<8x1xf32> to vector<8x8xf32>
    %100 = arith.subf %96, %99 : vector<8x8xf32>
    %101 = math.exp %100 : vector<8x8xf32>
    %cst_38 = arith.constant dense<0.000000e+00> : vector<8xf32>
    %102 = vector.multi_reduction <add>, %101, %cst_38 [1] : vector<8x8xf32> to vector<8xf32>
    %103 = vector.shape_cast %102 : vector<8xf32> to vector<8x1xf32>
    %104 = tpu.reciprocal %103 {approx = true} : vector<8x1xf32> -> vector<8x1xf32>
    %105 = vector.broadcast %104 : vector<8x1xf32> to vector<8x8xf32>
    %106 = arith.mulf %101, %105 : vector<8x8xf32>
    %107 = arith.truncf %106 : vector<8x8xf32> to vector<8x8xbf16>
    %cst_39 = arith.constant dense<0.000000e+00> : vector<8x8xf32>
    %108 = tpu.matmul %107, %94, %cst_39 {dimension_numbers = #tpu.dot_dimension_numbers<[1], [0], [0], [1], [0, 0, 1, 1], [], []>} : vector<8x8xbf16>, vector<8x8xbf16>, vector<8x8xf32> -> vector<8x8xf32>
    %109 = vector.extract_strided_slice %24 {offsets = [0, 24], sizes = [8, 8], strides = [1, 1]} : vector<8x96xf32> to vector<8x8xf32>
    %110 = arith.mulf %109, %3 : vector<8x8xf32>
    %c4_i32_40 = arith.constant 4 : i32
    %111 = tpu.dynamic_rotate %109 by %c4_i32_40 dim 1 : vector<8x8xf32>, i32 -> vector<8x8xf32>
    %112 = arith.mulf %111, %4 : vector<8x8xf32>
    %113 = arith.addf %110, %112 : vector<8x8xf32>
    %114 = arith.truncf %113 : vector<8x8xf32> to vector<8x8xbf16>
    %115 = vector.extract_strided_slice %24 {offsets = [0, 56], sizes = [8, 8], strides = [1, 1]} : vector<8x96xf32> to vector<8x8xf32>
    %116 = arith.mulf %115, %3 : vector<8x8xf32>
    %c4_i32_41 = arith.constant 4 : i32
    %117 = tpu.dynamic_rotate %115 by %c4_i32_41 dim 1 : vector<8x8xf32>, i32 -> vector<8x8xf32>
    %118 = arith.mulf %117, %4 : vector<8x8xf32>
    %119 = arith.addf %116, %118 : vector<8x8xf32>
    %120 = arith.truncf %119 : vector<8x8xf32> to vector<8x8xbf16>
    %121 = vector.extract_strided_slice %24 {offsets = [0, 88], sizes = [8, 8], strides = [1, 1]} : vector<8x96xf32> to vector<8x8xf32>
    %122 = arith.truncf %121 : vector<8x8xf32> to vector<8x8xbf16>
    %cst_42 = arith.constant dense<0.000000e+00> : vector<8x8xf32>
    %123 = tpu.matmul %114, %120, %cst_42 {dimension_numbers = #tpu.dot_dimension_numbers<[1], [1], [0], [0], [0, 0, 1, 0], [], []>} : vector<8x8xbf16>, vector<8x8xbf16>, vector<8x8xf32> -> vector<8x8xf32>
    %124 = arith.addf %123, %2 : vector<8x8xf32>
    %cst_43 = arith.constant dense<0xFF800000> : vector<8xf32>
    %125 = vector.multi_reduction <maximumf>, %124, %cst_43 [1] : vector<8x8xf32> to vector<8xf32>
    %126 = vector.shape_cast %125 : vector<8xf32> to vector<8x1xf32>
    %127 = vector.broadcast %126 : vector<8x1xf32> to vector<8x8xf32>
    %128 = arith.subf %124, %127 : vector<8x8xf32>
    %129 = math.exp %128 : vector<8x8xf32>
    %cst_44 = arith.constant dense<0.000000e+00> : vector<8xf32>
    %130 = vector.multi_reduction <add>, %129, %cst_44 [1] : vector<8x8xf32> to vector<8xf32>
    %131 = vector.shape_cast %130 : vector<8xf32> to vector<8x1xf32>
    %132 = tpu.reciprocal %131 {approx = true} : vector<8x1xf32> -> vector<8x1xf32>
    %133 = vector.broadcast %132 : vector<8x1xf32> to vector<8x8xf32>
    %134 = arith.mulf %129, %133 : vector<8x8xf32>
    %135 = arith.truncf %134 : vector<8x8xf32> to vector<8x8xbf16>
    %cst_45 = arith.constant dense<0.000000e+00> : vector<8x8xf32>
    %136 = tpu.matmul %135, %122, %cst_45 {dimension_numbers = #tpu.dot_dimension_numbers<[1], [0], [0], [1], [0, 0, 1, 1], [], []>} : vector<8x8xbf16>, vector<8x8xbf16>, vector<8x8xf32> -> vector<8x8xf32>
    %137 = tpu.concatenate %52, %80, %108, %136 in 1 : vector<8x8xf32>, vector<8x8xf32>, vector<8x8xf32>, vector<8x8xf32> -> vector<8x32xf32>
    %138 = arith.truncf %137 : vector<8x32xf32> to vector<8x32xbf16>
    %cst_46 = arith.constant dense<0.000000e+00> : vector<8x32xf32>
    %139 = tpu.matmul %138, %7, %cst_46 {dimension_numbers = #tpu.dot_dimension_numbers<[1], [0], [0], [1], [0, 0, 1, 1], [], []>} : vector<8x32xbf16>, vector<32x32xbf16>, vector<8x32xf32> -> vector<8x32xf32>
    %140 = arith.addf %1, %139 : vector<8x32xf32>
    %141 = arith.mulf %140, %140 : vector<8x32xf32>
    %cst_47 = arith.constant dense<0.000000e+00> : vector<8xf32>
    %142 = vector.multi_reduction <add>, %141, %cst_47 [1] : vector<8x32xf32> to vector<8xf32>
    %143 = vector.shape_cast %142 : vector<8xf32> to vector<8x1xf32>
    %cst_48 = arith.constant 3.200000e+01 : f32
    %144 = vector.broadcast %cst_48 : f32 to vector<8x1xf32>
    %145 = arith.divf %143, %144 : vector<8x1xf32>
    %cst_49 = arith.constant 9.99999997E-7 : f32
    %146 = vector.broadcast %cst_49 : f32 to vector<8x1xf32>
    %147 = arith.addf %145, %146 : vector<8x1xf32>
    %148 = math.rsqrt %147 : vector<8x1xf32>
    %149 = vector.broadcast %148 : vector<8x1xf32> to vector<8x32xf32>
    %150 = arith.mulf %140, %149 : vector<8x32xf32>
    %151 = vector.broadcast %8 : vector<1x32xf32> to vector<8x32xf32>
    %152 = arith.mulf %150, %151 : vector<8x32xf32>
    %153 = arith.truncf %152 : vector<8x32xf32> to vector<8x32xbf16>
    %cst_50 = arith.constant dense<0.000000e+00> : vector<8x128xf32>
    %154 = tpu.matmul %153, %9, %cst_50 {dimension_numbers = #tpu.dot_dimension_numbers<[1], [0], [0], [1], [0, 0, 1, 1], [], []>} : vector<8x32xbf16>, vector<32x128xbf16>, vector<8x128xf32> -> vector<8x128xf32>
    %155 = vector.extract_strided_slice %154 {offsets = [0, 0], sizes = [8, 64], strides = [1, 1]} : vector<8x128xf32> to vector<8x64xf32>
    %156 = vector.extract_strided_slice %154 {offsets = [0, 64], sizes = [8, 64], strides = [1, 1]} : vector<8x128xf32> to vector<8x64xf32>
    %157 = arith.negf %155 : vector<8x64xf32>
    %158 = math.exp %157 : vector<8x64xf32>
    %cst_51 = arith.constant 1.000000e+00 : f32
    %159 = vector.broadcast %cst_51 : f32 to vector<8x64xf32>
    %160 = arith.addf %159, %158 : vector<8x64xf32>
    %161 = arith.divf %159, %160 : vector<8x64xf32>
    %162 = arith.mulf %155, %161 : vector<8x64xf32>
    %163 = arith.mulf %162, %156 : vector<8x64xf32>
    %164 = arith.truncf %163 : vector<8x64xf32> to vector<8x64xbf16>
    %cst_52 = arith.constant dense<0.000000e+00> : vector<8x32xf32>
    %165 = tpu.matmul %164, %10, %cst_52 {dimension_numbers = #tpu.dot_dimension_numbers<[1], [0], [0], [1], [0, 0, 1, 1], [], []>} : vector<8x64xbf16>, vector<64x32xbf16>, vector<8x32xf32> -> vector<8x32xf32>
    %166 = arith.addf %140, %165 : vector<8x32xf32>
    %c0_53 = arith.constant 0 : index
    %c0_54 = arith.constant 0 : index
    %c0_55 = arith.constant 0 : index
    %167 = vector.load %arg11[%c0_53, %c0_54, %c0_55] : memref<1x8x32xf32, #tpu.memory_space<vmem>>, vector<1x8x32xf32>
    %168 = vector.shape_cast %167 : vector<1x8x32xf32> to vector<8x32xf32>
    %169 = vector.shape_cast %166 : vector<8x32xf32> to vector<1x8x32xf32>
    tpu.vector_store %arg11[%c0_53, %c0_54, %c0_55], %169 {strides = array<i32>} : memref<1x8x32xf32, #tpu.memory_space<vmem>>, vector<1x8x32xf32>,
    return
  }
  func.func @transform_0(%arg0: i32) -> (i32, i32) {
    %c0_i32 = arith.constant 0 : i32
    %c0_i32_0 = arith.constant 0 : i32
    %c0_i32_1 = arith.constant 0 : i32
    return %c0_i32, %c0_i32_0 : i32, i32
  }
  func.func @transform_1(%arg0: i32) -> (i32, i32) {
    %c0_i32 = arith.constant 0 : i32
    %c0_i32_0 = arith.constant 0 : i32
    %c0_i32_1 = arith.constant 0 : i32
    return %c0_i32, %c0_i32_0 : i32, i32
  }
  func.func @transform_2(%arg0: i32) -> (i32, i32) {
    %c0_i32 = arith.constant 0 : i32
    %c0_i32_0 = arith.constant 0 : i32
    %c0_i32_1 = arith.constant 0 : i32
    return %c0_i32, %c0_i32_0 : i32, i32
  }
  func.func @transform_3(%arg0: i32) -> (i32, i32, i32) {
    %c0_i32 = arith.constant 0 : i32
    %c0_i32_0 = arith.constant 0 : i32
    %c0_i32_1 = arith.constant 0 : i32
    return %arg0, %c0_i32, %c0_i32_0 : i32, i32, i32
  }
  func.func @transform_4(%arg0: i32) -> (i32, i32) {
    %c0_i32 = arith.constant 0 : i32
    %c0_i32_0 = arith.constant 0 : i32
    %c0_i32_1 = arith.constant 0 : i32
    return %c0_i32, %c0_i32_0 : i32, i32
  }
  func.func @transform_5(%arg0: i32) -> (i32, i32) {
    %c0_i32 = arith.constant 0 : i32
    %c0_i32_0 = arith.constant 0 : i32
    %c0_i32_1 = arith.constant 0 : i32
    return %c0_i32, %c0_i32_0 : i32, i32
  }
  func.func @transform_6(%arg0: i32) -> (i32, i32) {
    %c0_i32 = arith.constant 0 : i32
    %c0_i32_0 = arith.constant 0 : i32
    %c0_i32_1 = arith.constant 0 : i32
    return %c0_i32, %c0_i32_0 : i32, i32
  }
  func.func @transform_7(%arg0: i32) -> (i32, i32) {
    %c0_i32 = arith.constant 0 : i32
    %c0_i32_0 = arith.constant 0 : i32
    %c0_i32_1 = arith.constant 0 : i32
    return %c0_i32, %c0_i32_0 : i32, i32
  }
  func.func @transform_8(%arg0: i32) -> (i32, i32) {
    %c0_i32 = arith.constant 0 : i32
    %c0_i32_0 = arith.constant 0 : i32
    %c0_i32_1 = arith.constant 0 : i32
    return %c0_i32, %c0_i32_0 : i32, i32
  }
  func.func @transform_9(%arg0: i32) -> (i32, i32) {
    %c0_i32 = arith.constant 0 : i32
    %c0_i32_0 = arith.constant 0 : i32
    %c0_i32_1 = arith.constant 0 : i32
    return %c0_i32, %c0_i32_0 : i32, i32
  }
  func.func @transform_10(%arg0: i32) -> (i32, i32, i32) {
    %c0_i32 = arith.constant 0 : i32
    %c0_i32_0 = arith.constant 0 : i32
    %c0_i32_1 = arith.constant 0 : i32
    return %arg0, %c0_i32, %c0_i32_0 : i32, i32, i32
  }
}

</mosaic_0001>

<bundles_post_ra>
// kernel: tpu_custom_call.1
= control target key start
LH: loop header
LB: loop body
LE: loop exit
PB: predicated region body
PF: predicated region fallthrough
CT: control target
= control target key end

     0   :  { %15 = vsyncpa [#allocation3], 0  ;;  %s2546_s0 = inlined_call_operand.hbm [shape: f32[8,8], index: 0, kind: input, shape index: {}]   ;;  %s2547_s1 = inlined_call_operand.hbm [shape: f32[8,8], index: 1, kind: input, shape index: {}]   ;;  %s2548_s2 = inlined_call_operand.hbm [shape: f32[8,8], index: 2, kind: input, shape index: {}]   ;;  %s2549_s3 = inlined_call_operand.vmem [shape: f32[2,8,32], index: 3, kind: input, shape index: {}]   ;;  %s2550_s4 = inlined_call_operand.hbm [shape: f32[1,32], index: 4, kind: input, shape index: {}]   ;;  %s2551_s5 = inlined_call_operand.vmem [shape: bf16[32,96], index: 5, kind: input, shape index: {}]   ;;  %s2552_s6 = inlined_call_operand.vmem [shape: bf16[32,32], index: 6, kind: input, shape index: {}]   ;;  %s2553_s7 = inlined_call_operand.hbm [shape: f32[1,32], index: 7, kind: input, shape index: {}]   ;;  %s2554_s8 = inlined_call_operand.hbm [shape: bf16[32,128], index: 8, kind: input, shape index: {}]   ;;  %s2555_s9 = inlined_call_operand.vmem [shape: bf16[64,32], index: 9, kind: input, shape index: {}]   ;;  %s2556_s10 = inlined_call_operand.hbm [shape: f32[2,8,32], index: 10, kind: output, shape index: {}]  }
   0x1   :  { %16 = vsyncpa [#allocation6], 0 }
   0x2   :  { %17 = vsyncpa [#allocation9], 0 }
   0x3   :  { %18 = vsyncpa [#allocation12], 0 }
   0x4   :  { %19 = vsyncpa [#allocation4], 0 }
   0x5   :  { %21 = vsyncpa [#allocation4 + $0x1], 0  ;;  %s2149_s13 = smov 0   ;;  %s2151_s14 = smov 0  }
   0x6   :  { %s2153_s15 = smov 0   ;;  %s2155_s16 = smov 0  }
   0x7 LB: > { %s2170_s17 = sadd.s32 4294967295, %s2058_s16   ;;  %s1504_s18 = sadd.s32 4294967294, %s2058_s16   ;;  %s2058_s16 = sphi %s2155_s16, %s2589_s16   ;;  %s2054_s15 = sphi %s2153_s15, %s2588_s15   ;;  %s2050_s14 = sphi %s2151_s14, %s2587_s14   ;;  %s2046_s13 = sphi %s2149_s13, %s2586_s13  }
   0x8   : > { %s2174_s19 = sadd.s32 1, %s2058_s16   ;;  %s249_s20 = sadd.s32 1, %s2054_s15 }
   0x9   : > { %s246_s21 = ssub.s32 %s2058_s16, %s2174_s19  ;;  %p259_p0 = scmp.ne.s32.totalorder %s2054_s15, %s2050_s14 }
   0xa   : > { %p247_p1 = scmp.eq.s32.totalorder %s246_s21, 0  ;;  %p260_p2 = scmp.eq.s32.totalorder %s2170_s17, 1 }
   0xb   : > { %p265_p3 = scmp.ne.s32.totalorder %s2050_s14, %s2046_s13  ;;  %p266_p4 = scmp.eq.s32.totalorder %s1504_s18, 1 }
   0xc   : > { %s2185_s22 = scalar_select %p247_p1, %s2054_s15, %s249_s20  }
   0xd   : > { %p2187_p5 = por %p260_p2, %p259_p0  ;;  %p2191_p6 = por %p266_p4, %p265_p3 }
   0xe   : > { %2564 = sst [smem:[#allocation19_spill]] %s2185_s22  ;;  %p1505_p7 = scmp.ge.s32.totalorder %s2058_s16, 1 }
   0xf   : > { %s2565_s23 = scalar_select %p2187_p5, 1, 0 }
  0x10   : > { %s2566_s24 = scalar_select %p2191_p6, 1, 0 }
  0x11   : > { %p273_p8 = scmp.lt.s32.totalorder %s2058_s16, 3  ;;  %p2557_p9 = scmp.eq.s32.totalorder %s2170_s17, 0 }
  0x12   : > { %s2060_s26 = smov [#allocation5]   ;;  %s2061_s28 = smov [#allocation8]  }
  0x13   : > { %p2198_p10 = pnand %p1505_p7, %p273_p8  ;;  %s297_s27 = sshll.u32 %s2060_s26, 4  ;;  %s298_s27 = int_to_ptr.vmem [resolvable:$true] %s297_s27 }
  0x14   : > { %s319_s29 = sshll.u32 %s2061_s28, 4  ;;  %s2062_s11 = smov [#allocation2]   ;;  %s320_s29 = int_to_ptr.vmem [resolvable:$true] %s319_s29 }
  0x15   : > { %s2567_s25 = scalar_select %p2198_p10, 1, 0 }
  0x16   : > { %p1691_p11 = pneg %p2198_p10  ;;  %s286_s12 = sshll.u32 %s2062_s11, 4  ;;  %s2210_s12 = int_to_ptr.vmem [resolvable:$true] %s286_s12 }
  0x17   : > { %s1837_s20 = scalar_lea.vmem %s298_s27, 128  ;;  %p1845_p3 = scmp.lt.s32.totalorder %s298_s27, %s298_s27 }
  0x18   : > { %p2206_p12 = pnand %p2557_p9, %p1691_p11  ;;  %p1838_p0 = scmp.ne.s32.totalorder %s298_s27, %s1837_s20 }
  0x19   : > { %p1846_p4 = scmp.lt.s32.totalorder %s1837_s20, %s1837_s20 }
  0x1a   : > { %p2214_p13 = pneg %p2206_p12 }
  0x1b   : > { %p1847_p7 = por %p1846_p4, %p1845_p3 }
  0x1c   : > { %p1840_p1 = pnand %p1838_p0, %p2214_p13 }
  0x1e   : > { %p1841_p2 = pneg %p1840_p1 }
  0x20   : > { %p1848_p8 = pnand %p1847_p7, %p1841_p2 }
  0x22   : > { %1851 = shalt.err (!%p1848_p8)
}
  0x23   : > { %1697 = dma.hbm_to_vmem [thread:$0]  (!%p2206_p12), %s2547_s1, 128, %s298_s27, [#allocation6]  }
  0x24   : > { %s1863_s28 = scalar_lea.vmem %s320_s29, 16  ;;  %s1870_s11 = scalar_lea.vmem %s320_s29, 32 }
  0x25   : > { %p1864_p11 = scmp.ne.s32.totalorder %s320_s29, %s1863_s28  ;;  %p1871_p0 = scmp.lt.s32.totalorder %s320_s29, %s320_s29 }
  0x26   : > { %p1872_p1 = scmp.lt.s32.totalorder %s1870_s11, %s1863_s28 }
  0x27   : > { %p1866_p9 = pnand %p1864_p11, %p2214_p13 }
  0x28   : > { %p1873_p5 = por %p1872_p1, %p1871_p0 }
  0x29   : > { %p1867_p6 = pneg %p1866_p9 }
  0x2b   : > { %p1874_p10 = pnand %p1873_p5, %p1867_p6 }
  0x2d   : > { %1877 = shalt.err (!%p1874_p10)
}
  0x2e   : > { %1703 = dma.hbm_to_vmem [thread:$0]  (!%p2206_p12), %s2550_s4, 16, %s320_s29, [#allocation9]  }
  0x2f   : > { %s1889_s27 = scalar_lea.vmem %s2210_s12, 128  ;;  %p1897_p4 = scmp.lt.s32.totalorder %s2210_s12, %s2210_s12 }
  0x30   : > { %p1890_p2 = scmp.ne.s32.totalorder %s2210_s12, %s1889_s27  ;;  %p1898_p7 = scmp.lt.s32.totalorder %s1889_s27, %s1889_s27 }
  0x32   : > { %p1892_p9 = pnand %p1890_p2, %p2214_p13  ;;  %p1899_p5 = por %p1898_p7, %p1897_p4 }
  0x34   : > { %p1893_p3 = pneg %p1892_p9 }
  0x36   : > { %p1900_p6 = pnand %p1899_p5, %p1893_p3 }
  0x38   : > { %1903 = shalt.err (!%p1900_p6)
}
  0x39   : > { %1694 = dma.hbm_to_vmem [thread:$0]  (!%p2206_p12), %s2546_s0, 128, %s2210_s12, [#allocation3]  }
  0x3a   : > { %s2063_s29 = smov [#allocation7]   ;;  %s2064_s28 = smov [#allocation10]  }
  0x3b   : > { %s308_s26 = sshll.u32 %s2063_s29, 4  ;;  %s336_s11 = sshll.u32 %s2064_s28, 4  ;;  %s309_s26 = int_to_ptr.vmem [resolvable:$true] %s308_s26  ;;  %s337_s11 = int_to_ptr.vmem [resolvable:$true] %s336_s11 }
  0x3c   : > { %s1915_s20 = scalar_lea.vmem %s309_s26, 128  ;;  %p1923_p0 = scmp.lt.s32.totalorder %s309_s26, %s309_s26 }
  0x3d   : > { %p1916_p10 = scmp.ne.s32.totalorder %s309_s26, %s1915_s20  ;;  %p1924_p1 = scmp.lt.s32.totalorder %s1915_s20, %s1915_s20 }
  0x3f   : > { %p1918_p8 = pnand %p1916_p10, %p2214_p13  ;;  %p1925_p2 = por %p1924_p1, %p1923_p0 }
  0x41   : > { %p1919_p11 = pneg %p1918_p8 }
  0x43   : > { %p1926_p9 = pnand %p1925_p2, %p1919_p11 }
  0x45   : > { %1929 = shalt.err (!%p1926_p9)
}
  0x46   : > { %1700 = dma.hbm_to_vmem [thread:$0]  (!%p2206_p12), %s2548_s2, 128, %s309_s26, [#allocation6]  }
  0x47   : > { %s1941_s12 = scalar_lea.vmem %s337_s11, 16  ;;  %s1948_s21 = scalar_lea.vmem %s337_s11, 32 }
  0x48   : > { %p1942_p3 = scmp.ne.s32.totalorder %s337_s11, %s1941_s12  ;;  %p1949_p5 = scmp.lt.s32.totalorder %s337_s11, %s337_s11 }
  0x49   : > { %p1950_p6 = scmp.lt.s32.totalorder %s1948_s21, %s1941_s12 }
  0x4a   : > { %p1944_p4 = pnand %p1942_p3, %p2214_p13 }
  0x4b   : > { %p1951_p10 = por %p1950_p6, %p1949_p5 }
  0x4c   : > { %p1945_p7 = pneg %p1944_p4 }
  0x4e   : > { %p1952_p8 = pnand %p1951_p10, %p1945_p7 }
  0x50   : > { %1955 = shalt.err (!%p1952_p8)
}
  0x51   : > { %1706 = dma.hbm_to_vmem [thread:$0]  (!%p2206_p12), %s2553_s7, 16, %s337_s11, [#allocation9]  }
  0x52   : > { %s2065_s26 = smov [#allocation11]  }
  0x53   : > { %s346_s20 = sshll.u32 %s2065_s26, 4  ;;  %s347_s20 = int_to_ptr.vmem [resolvable:$true] %s346_s20 }
  0x54   : > { %s1967_s27 = scalar_lea.vmem %s347_s20, 256  ;;  %p1975_p2 = scmp.lt.s32.totalorder %s347_s20, %s347_s20 }
  0x55   : > { %p1968_p11 = scmp.ne.s32.totalorder %s347_s20, %s1967_s27  ;;  %p1976_p9 = scmp.lt.s32.totalorder %s1967_s27, %s1967_s27 }
  0x57   : > { %p1970_p0 = pnand %p1968_p11, %p2214_p13  ;;  %p1977_p3 = por %p1976_p9, %p1975_p2 }
  0x59   : > { %p1971_p1 = pneg %p1970_p0 }
  0x5b   : > { %p1978_p4 = pnand %p1977_p3, %p1971_p1 }
  0x5d   : > { %1981 = shalt.err (!%p1978_p4)
}
  0x5e   : > { %s2066_s22 = smov 64   ;;  %s2067_s12 = smov 4  }
  0x5f   : > { %1709 = dma.hbm_to_vmem [thread:$0]  (!%p2206_p12), %s2554_s8, 256, %s347_s20, [#allocation12], %s2066_s22, %s2066_s22, %s2067_s12  }
  0x60   : > { %p2570_p7 = scmp.ne.s32.totalorder %s2567_s25, 0 }
  0x61   : > { %p2571_p5 = scmp.eq.s32.totalorder (!%p2570_p7), %s2170_s17, 0 }
  0x62   : > { %372 = sbr.rel (%p2570_p7) target bundleno = 2831 (0xb0f), region = 60 }
  0x67   : > { %2025 = dma.done.wait (%p2571_p5), [#allocation3], 128   ;;  %p2572_p13 = pmov %p2571_p5 }
  0x68   : > { %p2573_p6 = pmov %p2571_p5 }
  0x69   : > { %2027 = vsyncadd (%p2572_p13), [#allocation3], 4294967168 }
  0x6a   : > { %2029 = dma.done.wait (%p2573_p6), [#allocation6], 256   ;;  %p2574_p10 = pmov %p2571_p5 }
  0x6b   : > { %p2575_p8 = pmov %p2571_p5 }
  0x6c   : > { %2031 = vsyncadd (%p2574_p10), [#allocation6], 4294967040 }
  0x6d   : > { %2033 = dma.done.wait (%p2575_p8), [#allocation9], 32   ;;  %p2576_p12 = pmov %p2571_p5 }
  0x6e   : > { %p2577_p11 = pmov %p2571_p5 }
  0x6f   : > { %2035 = vsyncadd (%p2576_p12), [#allocation9], 4294967264 }
  0x70   : > { %2037 = dma.done.wait (%p2577_p11), [#allocation12], 256   ;;  %p2578_p0 = pmov %p2571_p5 }
  0x71   : > { %p429_p1 = scmp.lt.s32.totalorder %s2170_s17, 1  ;;  %vm461_vm0 = vcmask 261120   ;;  %v1792_v3 = vld [vmem:[%s2551_s5 + $0x8] sm:$0xff]   ;;  %v2068_v4 = vmov 0.0   ;;  %vm2069_vm1 = vmmov 0   ;;  %v1793_v5 = vld [vmem:[%s2551_s5] sm:$0xff]  }
  0x72   : > { %2039 = vsyncadd (%p2578_p0), [#allocation12], 4294967040  ;;  %1581 = vmatprep.subr.bf16.mxu0 %v2068_v4  ;;  %1585 = vmatprep.mubr.msk.bf16.mxu0 %vm2069_vm1, %v2068_v4  ;;  %v1522_v10 = vld [vmem:[#allocation8] ss:$0 sm:$0xff]  ;;  %s2070_s12 = smov 88   ;;  %s2071_s21 = smov 96  }
  0x73   : > { %s430_s25 = scalar_select %p429_p1, %s2170_s17, 1  ;;  %1582 = vmatpush3.bf16.msra.mxu0 %v1792_v3  ;;  %1589 = vmatprep.subr.bf16.mxu1 %v2068_v4  ;;  %v437_v25 = vld [vmem:[#allocation7] sm:$0xff]  ;;  %vm534_vm2 = vcmask 1047616   ;;  %v2360_v39 = vld [vmem:[#allocation5] sm:$0xff]  ;;  %vm578_vm3 = vcmask 64512   ;;  %vm643_vm4 = vcmask 1043456  }
  0x74   : > { %1583 = vmatprep.subr.bf16.mxu0 %v2068_v4  ;;  %1591 = vmatprep.mubr.msk.bf16.mxu1 %vm2069_vm1, %v2068_v4  ;;  %s2072_s29 = smov 120   ;;  %s2075_s18 = smov 72   ;;  %vm1156_vm5 = vcmask 130048   ;;  %vm1158_vm6 = vcmask 195584   ;;  %vm1325_vm7 = vcmask 523264  }
  0x75   : > { %s1521_s30 = sshll.u32 %s430_s25, 3  ;;  %s2073_s25 = smov 80  }
  0x76   : > { %s432_s28 = scalar_lea.vmem %s2549_s3, %s1521_s30  ;;  %s2074_s30 = smov 112  }
  0x77   : > { %v2288_v0 = vld [vmem:[%s432_s28] sm:$0xff]  ;;  %1584 = vmatpush3.bf16.msra.mxu0 %v1793_v5  ;;  %s2076_s11 = smov 104   ;;  %s2561_s28 = smov 8  }
  0x78   : > { %v460_v1 = vmul.f32 %v2288_v0, %v2288_v0  ;;  %1595 = vmatprep.subr.bf16.mxu0 %v2068_v4  ;;  %s2078_s26 = smov 4   ;;  %s2079_s20 = smov 32  }
  0x79   : > { %s2080_s27 = smov 28   ;;  %s2560_s22 = smov 40  }
  0x7a   : > { %v462_v2 = vsel %vm461_vm0, %v460_v1, 0.0  ;;  %p2583_p9 = scmp.ne.s32.totalorder %s2565_s23, 0 }
  0x7b   : > { %463 = vadd.xlane.f32.xlu0 %v462_v2 }
 0x104   : > { %v464_v6 = vpop.xlane.xlu0 %463 }
 0x105   : > { %v466_v7 = vmul.f32 0.03125, %v464_v6 }
 0x107   : > { %v467_v8 = vadd.f32 1e-06, %v466_v7 }
 0x109   : > { %1802 = vrsqrt.f32 %v467_v8 }
 0x116   : > { %v1803_v9 = vpop.eup %1802 }
 0x117   : > { %v469_v11 = vmul.f32 %v1803_v9, %v2288_v0 }
 0x119   : > { %v476_v12 = vmul.f32 %v1522_v10, %v469_v11 }
 0x11b   : > { %v477_v13 = vpack.c.bf16 %v476_v12, %v476_v12 }
 0x11d   : > { %1586 = vmatmul.mubr.msk.bf16.vlgmr.msra.gmra.mxu0 %vm461_vm0, %v477_v13 }
 0x11e   : > { %1597 = vmatprep.mubr.msk.bf16.mxu0 %vm2069_vm1, %v2068_v4 }
 0x1dd   : > { %v2311_v14 = vpop.f32.mrf.mxu0 }
 0x1de   : > { %711 = vrot.lane.b32.xlu1 %v2311_v14, %s2070_s12  ;;  %558 = vrot.lane.b32.xlu0 %v2311_v14, %s2071_s21 }
 0x1df   : > { %v1587_v15 = vpop.f32.mrf.mxu0 }
 0x1e1   : > { %v530_v16 = vpop.f32.mrf.mxu0 }
 0x1e2   : > { %691 = vrot.lane.b32.xlu1 %v2311_v14, %s2072_s29 }
 0x1e3   : > { %v1588_v17 = vpop.f32.mrf.mxu0 }
 0x1e6   : > { %863 = vrot.lane.b32.xlu1 %v2311_v14, %s2073_s25 }
 0x1ea   : > { %843 = vrot.lane.b32.xlu1 %v2311_v14, %s2074_s30 }
 0x1ee   : > { %1015 = vrot.lane.b32.xlu1 %v2311_v14, %s2075_s18 }
 0x1f2   : > { %995 = vrot.lane.b32.xlu1 %v2311_v14, %s2076_s11 }
 0x250   : > { %v712_v18 = vpop.permute.xlu1 %711  ;;  %v559_v19 = vpop.permute.xlu0 %558 }
 0x251   : > { %714 = vrot.lane.b32.xlu0 %v712_v18, %s2561_s28  ;;  %561 = vrot.lane.b32.xlu1 %v559_v19, %s2561_s28 }
 0x254   : > { %v692_v20 = vpop.permute.xlu1 %691 }
 0x255   : > { %694 = vrot.lane.b32.xlu1 %v692_v20, %s2561_s28 }
 0x258   : > { %v864_v21 = vpop.permute.xlu1 %863 }
 0x259   : > { %866 = vrot.lane.b32.xlu0 %v864_v21, %s2561_s28 }
 0x25c   : > { %v2331_v22 = vpop.permute.xlu1 %843 }
 0x25d   : > { %846 = vrot.lane.b32.xlu1 %v2331_v22, %s2561_s28 }
 0x260   : > { %v2335_v23 = vpop.permute.xlu1 %1015 }
 0x261   : > { %1018 = vrot.lane.b32.xlu0 %v2335_v23, %s2561_s28 }
 0x264   : > { %v2339_v24 = vpop.permute.xlu1 %995 }
 0x265   : > { %998 = vrot.lane.b32.xlu1 %v2339_v24, %s2561_s28 }
 0x269   : > { %542 = vrot.lane.b32.xlu1 %v437_v25, %s2078_s26 }
 0x2c3   : > { %v715_v26 = vpop.permute.xlu0 %714  ;;  %v562_v27 = vpop.permute.xlu1 %561 }
 0x2c4   : > { %v716_v28 = vsel %vm534_vm2, %v715_v26, %v712_v18  ;;  %v563_v29 = vsel %vm534_vm2, %v562_v27, %v559_v19 }
 0x2c5   : > { %717 = vrot.lane.b32.xlu1 %v716_v28, %s2561_s28  ;;  %564 = vrot.lane.b32.xlu0 %v563_v29, %s2561_s28 }
 0x2c7   : > { %v695_v30 = vpop.permute.xlu1 %694 }
 0x2c8   : > { %v696_v33 = vsel %vm534_vm2, %v695_v30, %v692_v20 }
 0x2c9   : > { %535 = vrot.lane.b32.xlu0 %v2311_v14, %s2561_s28 }
 0x2cb   : > { %v867_v31 = vpop.permute.xlu0 %866 }
 0x2cc   : > { %v868_v32 = vsel %vm534_vm2, %v867_v31, %v864_v21 }
 0x2cd   : > { %869 = vrot.lane.b32.xlu1 %v868_v32, %s2561_s28  ;;  %697 = vrot.lane.b32.xlu0 %v696_v33, %s2561_s28 }
 0x2cf   : > { %v847_v34 = vpop.permute.xlu1 %846 }
 0x2d0   : > { %v848_v35 = vsel %vm534_vm2, %v847_v34, %v2331_v22 }
 0x2d1   : > { %849 = vrot.lane.b32.xlu0 %v848_v35, %s2561_s28 }
 0x2d3   : > { %v1019_v36 = vpop.permute.xlu0 %1018 }
 0x2d4   : > { %v1020_v37 = vsel %vm534_vm2, %v1019_v36, %v2335_v23 }
 0x2d5   : > { %1021 = vrot.lane.b32.xlu1 %v1020_v37, %s2561_s28 }
 0x2d7   : > { %v999_v38 = vpop.permute.xlu1 %998 }
 0x2d8   : > { %v1000_v40 = vsel %vm534_vm2, %v999_v38, %v2339_v24 }
 0x2d9   : > { %553 = vrot.lane.b32.xlu1 %v2360_v39, %s2079_s20  ;;  %1001 = vrot.lane.b32.xlu0 %v1000_v40, %s2561_s28  ;;  %s2082_s20 = smov 36  }
 0x2db   : > { %v543_v41 = vpop.permute.xlu1 %542 }
 0x337   : > { %v565_v42 = vpop.permute.xlu0 %564  ;;  %v718_v45 = vpop.permute.xlu1 %717 }
 0x338   : > { %v566_v43 = vsel %vm534_vm2, %v565_v42, %v559_v19  ;;  %v719_v47 = vsel %vm534_vm2, %v718_v45, %v712_v18  ;;  %v533_v45 = vmul.f32 %v2311_v14, %v2360_v39 }
 0x339   : > { %v567_v44 = vmul.f32 %v566_v43, %v543_v41  ;;  %v720_v49 = vmul.f32 %v719_v47, %v543_v41 }
 0x33b   : > { %v536_v46 = vpop.permute.xlu0 %535  ;;  %569 = vrot.lane.b32.xlu0 %v567_v44, %s2080_s27  ;;  %s2562_s27 = smov 48  }
 0x33c   : > { %v537_v48 = vsel %vm534_vm2, %v536_v46, %v2311_v14 }
 0x33d   : > { %538 = vrot.lane.b32.xlu1 %v537_v48, %s2561_s28 }
 0x33f   : > { %v698_v50 = vpop.permute.xlu0 %697  ;;  %707 = vrot.lane.b32.xlu0 %v2360_v39, %s2560_s22  ;;  %v870_v51 = vpop.permute.xlu1 %869  ;;  %s2084_s22 = smov 44  }
 0x340   : > { %v699_v52 = vsel %vm534_vm2, %v698_v50, %v692_v20  ;;  %v871_v53 = vsel %vm534_vm2, %v870_v51, %v864_v21 }
 0x341   : > { %722 = vrot.lane.b32.xlu1 %v720_v49, %s2082_s20  ;;  %v700_v54 = vmul.f32 %v699_v52, %v543_v41  ;;  %v872_v55 = vmul.f32 %v871_v53, %v543_v41  ;;  %s2563_s20 = smov 16  }
 0x343   : > { %687 = vrot.lane.b32.xlu0 %v2360_v39, %s2561_s28  ;;  %v850_v56 = vpop.permute.xlu0 %849  ;;  %s2086_s28 = smov 56  }
 0x344   : > { %v851_v58 = vsel %vm534_vm2, %v850_v56, %v2331_v22 }
 0x345   : > { %859 = vrot.lane.b32.xlu1 %v2360_v39, %s2562_s27  ;;  %v852_v60 = vmul.f32 %v851_v58, %v543_v41  ;;  %s2089_s27 = smov 24  }
 0x347   : > { %702 = vrot.lane.b32.xlu0 %v700_v54, %s2078_s26  ;;  %v1022_v57 = vpop.permute.xlu1 %1021  ;;  %s2087_s26 = smov 12  }
 0x348   : > { %v1023_v59 = vsel %vm534_vm2, %v1022_v57, %v2335_v23  ;;  %v435_v57 = vld [vmem:[#allocation2] sm:$0xff] }
 0x349   : > { %874 = vrot.lane.b32.xlu1 %v872_v55, %s2084_s22  ;;  %v1024_v62 = vmul.f32 %v1023_v59, %v543_v41  ;;  %s2088_s22 = smov 52  }
 0x34b   : > { %839 = vrot.lane.b32.xlu0 %v2360_v39, %s2563_s20  ;;  %v1002_v61 = vpop.permute.xlu0 %1001  ;;  %s2090_s20 = smov 20   ;;  %v554_v2 = vpop.permute.xlu1 %553 }
 0x34c   : > { %v1003_v63 = vsel %vm534_vm2, %v1002_v61, %v2339_v24  ;;  %v556_v3 = vmul.f32 %v554_v2, %v2311_v14 }
 0x34d   : > { %1011 = vrot.lane.b32.xlu1 %v2360_v39, %s2086_s28  ;;  %v1004_v1 = vmul.f32 %v1003_v63, %v543_v41 }
 0x34f   : > { %854 = vrot.lane.b32.xlu0 %v852_v60, %s2087_s26  ;;  %s2091_s26 = smov 124  }
 0x351   : > { %1026 = vrot.lane.b32.xlu1 %v1024_v62, %s2088_s22 }
 0x353   : > { %991 = vrot.lane.b32.xlu0 %v2360_v39, %s2089_s27 }
 0x355   : > { %1006 = vrot.lane.b32.xlu1 %v1004_v1, %s2090_s20  ;;  %s2582_s20 = smov 16  }
 0x3ad   : > { %v570_v5 = vpop.permute.xlu0 %569 }
 0x3ae   : > { %v572_v6 = vadd.f32 %v570_v5, %v556_v3 }
 0x3af   : > { %v539_v7 = vpop.permute.xlu1 %538 }
 0x3b0   : > { %v573_v8 = vpack.c.bf16 %v572_v6, %v572_v6  ;;  %v540_v9 = vsel %vm534_vm2, %v539_v7, %v2311_v14 }
 0x3b1   : > { %v545_v10 = vmul.f32 %v543_v41, %v540_v9  ;;  %v708_v11 = vpop.permute.xlu0 %707 }
 0x3b2   : > { %v710_v12 = vmul.f32 %v708_v11, %v2311_v14  ;;  %576 = vrot.lane.b32.xlu0 %v573_v8, %s2071_s21  ;;  %s2579_s21 = smov 48  }
 0x3b3   : > { %547 = vrot.lane.b32.xlu1 %v545_v10, %s2091_s26  ;;  %v723_v13 = vpop.permute.xlu1 %722 }
 0x3b4   : > { %v725_v15 = vadd.f32 %v723_v13, %v710_v12 }
 0x3b5   : > { %v688_v16 = vpop.permute.xlu0 %687 }
 0x3b6   : > { %v726_v17 = vpack.c.bf16 %v725_v15, %v725_v15  ;;  %v690_v19 = vmul.f32 %v688_v16, %v2311_v14 }
 0x3b7   : > { %v860_v18 = vpop.permute.xlu1 %859 }
 0x3b8   : > { %731 = vrot.lane.b32.xlu0 %v726_v17, %s2070_s12  ;;  %v862_v21 = vmul.f32 %v860_v18, %v2311_v14  ;;  %s2092_s12 = smov 64  }
 0x3b9   : > { %v703_v20 = vpop.permute.xlu0 %702 }
 0x3ba   : > { %v705_v22 = vadd.f32 %v703_v20, %v690_v19 }
 0x3bb   : > { %v875_v23 = vpop.permute.xlu1 %874 }
 0x3bc   : > { %v706_v24 = vpack.c.bf16 %v705_v22, %v705_v22  ;;  %v877_v25 = vadd.f32 %v875_v23, %v862_v21 }
 0x3bd   : > { %v840_v26 = vpop.permute.xlu0 %839 }
 0x3be   : > { %v878_v27 = vpack.c.bf16 %v877_v25, %v877_v25  ;;  %728 = vrot.lane.b32.xlu1 %v706_v24, %s2072_s29  ;;  %v842_v29 = vmul.f32 %v840_v26, %v2311_v14  ;;  %s2580_s29 = smov 40  }
 0x3bf   : > { %v1012_v28 = vpop.permute.xlu1 %1011 }
 0x3c0   : > { %883 = vrot.lane.b32.xlu0 %v878_v27, %s2073_s25  ;;  %v1014_v31 = vmul.f32 %v1012_v28, %v2311_v14  ;;  %s2581_s25 = smov 8  }
 0x3c1   : > { %v855_v30 = vpop.permute.xlu0 %854 }
 0x3c2   : > { %v857_v32 = vadd.f32 %v855_v30, %v842_v29 }
 0x3c3   : > { %v1027_v33 = vpop.permute.xlu1 %1026 }
 0x3c4   : > { %v858_v34 = vpack.c.bf16 %v857_v32, %v857_v32  ;;  %v1029_v35 = vadd.f32 %v1027_v33, %v1014_v31 }
 0x3c5   : > { %v992_v36 = vpop.permute.xlu0 %991 }
 0x3c6   : > { %v1030_v37 = vpack.c.bf16 %v1029_v35, %v1029_v35  ;;  %v994_v38 = vmul.f32 %v992_v36, %v2311_v14  ;;  %880 = vrot.lane.b32.xlu1 %v858_v34, %s2074_s30  ;;  %v574_v35 = vpack.c.bf16 %v2311_v14, %v2311_v14 }
 0x3c7   : > { %v1007_v40 = vpop.permute.xlu1 %1006 }
 0x3c8   : > { %v1009_v41 = vadd.f32 %v1007_v40, %v994_v38  ;;  %1035 = vrot.lane.b32.xlu0 %v1030_v37, %s2075_s18 }
 0x3ca   : > { %v1010_v42 = vpack.c.bf16 %v1009_v41, %v1009_v41 }
 0x3cc   : > { %1032 = vrot.lane.b32.xlu1 %v1010_v42, %s2076_s11  ;;  %s426_s11 = sand.u32 1, %s2050_s14  }
 0x424   : > { %v577_v43 = vpop.permute.xlu0 %576 }
 0x425   : > { %v548_v44 = vpop.permute.xlu1 %547  ;;  %v583_v46 = vsel %vm578_vm3, %v577_v43, 0 }
 0x426   : > { %1590 = vmatpush3.bf16.xpose.msra.mxu1 %v583_v46  ;;  %v550_v47 = vadd.f32 %v548_v44, %v533_v45 }
 0x427   : > { %1601 = vmatprep.subr.bf16.mxu1 %v2068_v4 }
 0x428   : > { %v551_v49 = vpack.c.bf16 %v550_v47, %v550_v47 }
 0x42a   : > { %v732_v48 = vpop.permute.xlu0 %731 }
 0x42b   : > { %v737_v50 = vsel %vm578_vm3, %v732_v48, 0 }
 0x42d   : > { %1592 = vmatmul.mubr.msk.bf16.vlgmr.msra.gmra.mxu1 %vm578_vm3, %v551_v49 }
 0x42e   : > { %1602 = vmatpush3.bf16.xpose.msra.mxu1 %v737_v50  ;;  %1603 = vmatprep.mubr.msk.bf16.mxu1 %vm2069_vm1, %v2068_v4 }
 0x42f   : > { %1613 = vmatprep.subr.bf16.mxu1 %v2068_v4 }
 0x430   : > { %v729_v39 = vpop.permute.xlu1 %728 }
 0x432   : > { %v884_v51 = vpop.permute.xlu0 %883 }
 0x433   : > { %v889_v52 = vsel %vm578_vm3, %v884_v51, 0 }
 0x435   : > { %1604 = vmatmul.mubr.msk.bf16.vlgmr.msra.gmra.mxu1 %vm578_vm3, %v729_v39 }
 0x436   : > { %1614 = vmatpush3.bf16.xpose.msra.mxu1 %v889_v52  ;;  %1615 = vmatprep.mubr.msk.bf16.mxu1 %vm2069_vm1, %v2068_v4 }
 0x437   : > { %1625 = vmatprep.subr.bf16.mxu1 %v2068_v4 }
 0x438   : > { %v881_v54 = vpop.permute.xlu1 %880 }
 0x43a   : > { %v1036_v53 = vpop.permute.xlu0 %1035 }
 0x43b   : > { %v1041_v55 = vsel %vm578_vm3, %v1036_v53, 0 }
 0x43d   : > { %1616 = vmatmul.mubr.msk.bf16.vlgmr.msra.gmra.mxu1 %vm578_vm3, %v881_v54 }
 0x43e   : > { %1626 = vmatpush3.bf16.xpose.msra.mxu1 %v1041_v55  ;;  %1627 = vmatprep.mubr.msk.bf16.mxu1 %vm2069_vm1, %v2068_v4  ;;  %v1033_v56 = vpop.permute.xlu1 %1032 }
 0x43f   : > { %1637 = vmatprep.subr.bf16.mxu1 %v2068_v4 }
 0x445   : > { %1628 = vmatmul.mubr.msk.bf16.vlgmr.msra.gmra.mxu1 %vm578_vm3, %v1033_v56 }
 0x446   : > { %1641 = vmatprep.mubr.msk.bf16.mxu1 %vm2069_vm1, %v2068_v4 }
 0x4ed   : > { %v619_v58 = vpop.f32.mrf.mxu1 }
 0x4ee   : > { %v620_v59 = vadd.f32 %v619_v58, %v435_v57 }
 0x4ef   : > { %v1593_v60 = vpop.f32.mrf.mxu1 }
 0x4f0   : > { %v625_v61 = vsel %vm578_vm3, %v620_v59, -inf }
 0x4f1   : > { %626 = vmax.xlane.f32.xlu0 %v625_v61  ;;  %v622_v62 = vpop.f32.mrf.mxu1 }
 0x4f3   : > { %v1594_v63 = vpop.f32.mrf.mxu1 }
 0x4f5   : > { %v773_v1 = vpop.f32.mrf.mxu1 }
 0x4f6   : > { %v774_v2 = vadd.f32 %v773_v1, %v435_v57 }
 0x4f7   : > { %v1605_v3 = vpop.f32.mrf.mxu1 }
 0x4f8   : > { %v779_v5 = vsel %vm578_vm3, %v774_v2, -inf }
 0x4f9   : > { %780 = vmax.xlane.f32.xlu1 %v779_v5  ;;  %v776_v6 = vpop.f32.mrf.mxu1 }
 0x4fb   : > { %v1606_v7 = vpop.f32.mrf.mxu1 }
 0x4fd   : > { %v925_v8 = vpop.f32.mrf.mxu1 }
 0x4fe   : > { %v926_v9 = vadd.f32 %v925_v8, %v435_v57 }
 0x4ff   : > { %v1617_v10 = vpop.f32.mrf.mxu1 }
 0x500   : > { %v931_v11 = vsel %vm578_vm3, %v926_v9, -inf }
 0x501   : > { %932 = vmax.xlane.f32.xlu0 %v931_v11  ;;  %v928_v12 = vpop.f32.mrf.mxu1  ;;  %v1794_v11 = vld [vmem:[%s2552_s6 + $0x8] sm:$0xff]  }
 0x502   : > { %1638 = vmatpush3.bf16.msra.mxu1 %v1794_v11  ;;  %v1795_v12 = vld [vmem:[%s2552_s6] sm:$0xff]  }
 0x503   : > { %v1618_v13 = vpop.f32.mrf.mxu1  ;;  %1639 = vmatprep.subr.bf16.mxu1 %v2068_v4 }
 0x505   : > { %v1077_v15 = vpop.f32.mrf.mxu1 }
 0x506   : > { %v1078_v16 = vadd.f32 %v1077_v15, %v435_v57  ;;  %1640 = vmatpush3.bf16.msra.mxu1 %v1795_v12 }
 0x507   : > { %v1629_v17 = vpop.f32.mrf.mxu1  ;;  %1653 = vmatprep.subr.bf16.mxu1 %v2068_v4 }
 0x508   : > { %v1083_v18 = vsel %vm578_vm3, %v1078_v16, -inf }
 0x509   : > { %1084 = vmax.xlane.f32.xlu0 %v1083_v18  ;;  %v1080_v19 = vpop.f32.mrf.mxu1 }
 0x50b   : > { %v1630_v20 = vpop.f32.mrf.mxu1 }
 0x57a   : > { %v627_v21 = vpop.xlane.xlu0 %626 }
 0x57b   : > { %v628_v22 = vsub.f32 %v620_v59, %v627_v21 }
 0x57d   : > { %v629_v23 = vmul.f32 1.442695, %v628_v22 }
 0x57f   : > { %1804 = vpow2.f32 %v629_v23 }
 0x582   : > { %v781_v24 = vpop.xlane.xlu1 %780 }
 0x583   : > { %v782_v25 = vsub.f32 %v774_v2, %v781_v24 }
 0x585   : > { %v783_v26 = vmul.f32 1.442695, %v782_v25 }
 0x587   : > { %1806 = vpow2.f32 %v783_v26 }
 0x58a   : > { %v933_v29 = vpop.xlane.xlu0 %932 }
 0x58b   : > { %v934_v38 = vsub.f32 %v926_v9, %v933_v29 }
 0x58c   : > { %v1805_v27 = vpop.eup %1804 }
 0x58d   : > { %v631_v28 = vsel %vm578_vm3, %v1805_v27, 0.0  ;;  %v935_v40 = vmul.f32 1.442695, %v934_v38 }
 0x58e   : > { %632 = vadd.xlane.f32.xlu1 %v631_v28 }
 0x592   : > { %v1085_v30 = vpop.xlane.xlu0 %1084 }
 0x593   : > { %v1086_v31 = vsub.f32 %v1078_v16, %v1085_v30 }
 0x594   : > { %v1807_v32 = vpop.eup %1806 }
 0x595   : > { %v1087_v33 = vmul.f32 1.442695, %v1086_v31  ;;  %v785_v34 = vsel %vm578_vm3, %v1807_v32, 0.0 }
 0x596   : > { %786 = vadd.xlane.f32.xlu0 %v785_v34 }
 0x597   : > { %1808 = vpow2.f32 %v1087_v33 }
 0x598   : > { %1810 = vpow2.f32 %v935_v40 }
 0x59f   : > { %638 = vrot.lane.b32.xlu1 %v574_v35, %s2092_s12 }
 0x5a4   : > { %v1809_v36 = vpop.eup %1808 }
 0x5a5   : > { %v1089_v37 = vsel %vm578_vm3, %v1809_v36, 0.0  ;;  %v1811_v41 = vpop.eup %1810 }
 0x5a6   : > { %1090 = vadd.xlane.f32.xlu0 %v1089_v37  ;;  %v937_v42 = vsel %vm578_vm3, %v1811_v41, 0.0  ;;  %v1797_v37 = vld [vmem:[#allocation11] sm:$0xff]  }
 0x5bc   : > { %791 = vrot.lane.b32.xlu0 %v574_v35, %s2086_s28  ;;  %s1548_s28 = sshll.u32 %s2170_s17, 7 }
 0x5c3   : > { %938 = vadd.xlane.f32.xlu1 %v937_v42 }
 0x5d4   : > { %943 = vrot.lane.b32.xlu1 %v574_v35, %s2579_s21  ;;  %s2504_s21 = scalar_lea.hbm %s2556_s10, %s1548_s28 }
 0x5d8   : > { %1095 = vrot.lane.b32.xlu1 %v574_v35, %s2580_s29  ;;  %s1372_s29 = scalar_lea.sflag [#allocation4], %s426_s11 }
 0x617   : > { %v633_v14 = vpop.xlane.xlu1 %632 }
 0x618   : > { %1812 = vrcp.f32 %v633_v14  ;;  %v1537_v14 = vld [vmem:[#allocation10] ss:$0 sm:$0xff] }
 0x61b   : > { %v639_v43 = vpop.permute.xlu1 %638 }
 0x61c   : > { %v645_v44 = vsel %vm643_vm4, %v639_v43, 0 }
 0x61d   : > { %1596 = vmatpush3.bf16.msra.mxu0 %v645_v44 }
 0x61e   : > { %1607 = vmatprep.subr.bf16.mxu0 %v2068_v4 }
 0x61f   : > { %v787_v45 = vpop.xlane.xlu0 %786 }
 0x620   : > { %1814 = vrcp.f32 %v787_v45  ;;  %v1798_v45 = vld [vmem:[%s2555_s9 + $0x18] sm:$0xff]  }
 0x625   : > { %v1813_v46 = vpop.eup %1812 }
 0x626   : > { %v635_v47 = vmul.f32 %v1813_v46, %v1805_v27  ;;  %v1799_v46 = vld [vmem:[%s2555_s9 + $0x10] sm:$0xff]  }
 0x628   : > { %v636_v48 = vpack.c.bf16 %v635_v47, %v635_v47  ;;  %v1800_v47 = vld [vmem:[%s2555_s9 + $0x8] sm:$0xff]  }
 0x62a   : > { %1598 = vmatmul.mubr.msk.bf16.vlgmr.msra.gmra.mxu0 %vm578_vm3, %v636_v48  ;;  %v1801_v48 = vld [vmem:[%s2555_s9] sm:$0xff]  }
 0x62b   : > { %1609 = vmatprep.mubr.msk.bf16.mxu0 %vm2069_vm1, %v2068_v4 }
 0x62d   : > { %v1815_v49 = vpop.eup %1814 }
 0x62e   : > { %v789_v51 = vmul.f32 %v1815_v49, %v1807_v32 }
 0x62f   : > { %v1091_v50 = vpop.xlane.xlu0 %1090 }
 0x630   : > { %v790_v53 = vpack.c.bf16 %v789_v51, %v789_v51 }
 0x633   : > { %v792_v39 = vpop.permute.xlu0 %791 }
 0x634   : > { %v797_v52 = vsel %vm643_vm4, %v792_v39, 0 }
 0x635   : > { %1608 = vmatpush3.bf16.msra.mxu0 %v797_v52 }
 0x636   : > { %1619 = vmatprep.subr.bf16.mxu0 %v2068_v4 }
 0x638   : > { %1610 = vmatmul.mubr.msk.bf16.vlgmr.msra.gmra.mxu0 %vm578_vm3, %v790_v53 }
 0x639   : > { %1621 = vmatprep.mubr.msk.bf16.mxu0 %vm2069_vm1, %v2068_v4 }
 0x64c   : > { %v939_v54 = vpop.xlane.xlu1 %938 }
 0x64d   : > { %1816 = vrcp.f32 %v939_v54 }
 0x64e   : > { %1818 = vrcp.f32 %v1091_v50 }
 0x650   : > { %v944_v55 = vpop.permute.xlu1 %943 }
 0x651   : > { %v949_v56 = vsel %vm643_vm4, %v944_v55, 0 }
 0x652   : > { %1620 = vmatpush3.bf16.msra.mxu0 %v949_v56 }
 0x653   : > { %1631 = vmatprep.subr.bf16.mxu0 %v2068_v4 }
 0x654   : > { %v1096_v59 = vpop.permute.xlu1 %1095 }
 0x655   : > { %v1101_v62 = vsel %vm643_vm4, %v1096_v59, 0 }
 0x65a   : > { %v1817_v57 = vpop.eup %1816 }
 0x65b   : > { %v941_v58 = vmul.f32 %v1817_v57, %v1811_v41  ;;  %v1819_v61 = vpop.eup %1818 }
 0x65c   : > { %v1093_v63 = vmul.f32 %v1819_v61, %v1809_v36  ;;  %v1796_v36 = vld [vmem:[#allocation11 + $0x8] sm:$0xff]  }
 0x65d   : > { %v942_v60 = vpack.c.bf16 %v941_v58, %v941_v58 }
 0x65e   : > { %v1094_v1 = vpack.c.bf16 %v1093_v63, %v1093_v63 }
 0x65f   : > { %1622 = vmatmul.mubr.msk.bf16.vlgmr.msra.gmra.mxu0 %vm578_vm3, %v942_v60 }
 0x660   : > { %1632 = vmatpush3.bf16.msra.mxu0 %v1101_v62  ;;  %1633 = vmatprep.mubr.msk.bf16.mxu0 %vm2069_vm1, %v2068_v4 }
 0x661   : > { %1645 = vmatprep.subr.bf16.mxu0 %v2068_v4 }
 0x667   : > { %1634 = vmatmul.mubr.msk.bf16.vlgmr.msra.gmra.mxu0 %vm578_vm3, %v1094_v1 }
 0x668   : > { %1649 = vmatprep.mubr.msk.bf16.mxu0 %vm2069_vm1, %v2068_v4  ;;  %1646 = vmatpush3.bf16.msra.mxu0 %v1796_v36 }
 0x669   : > { %1647 = vmatprep.subr.bf16.mxu0 %v2068_v4 }
 0x66c   : > { %1648 = vmatpush3.bf16.msra.mxu0 %v1797_v37 }
 0x6ea   : > { %v681_v2 = vpop.f32.mrf.mxu0 }
 0x6ec   : > { %v1599_v3 = vpop.f32.mrf.mxu0 }
 0x6ee   : > { %v684_v5 = vpop.f32.mrf.mxu0 }
 0x6f0   : > { %v1600_v6 = vpop.f32.mrf.mxu0 }
 0x6f8   : > { %v833_v7 = vpop.f32.mrf.mxu0 }
 0x6f9   : > { %1144 = vrot.lane.b32.xlu0 %v833_v7, %s2581_s25  ;;  %s2093_s25 = smov [#allocation13]  }
 0x6fa   : > { %v1611_v8 = vpop.f32.mrf.mxu0  ;;  %s1986_s30 = sshll.u32 %s2093_s25, 4  ;;  %s1987_s30 = int_to_ptr.vmem [resolvable:$false] %s1986_s30 }
 0x6fb   : > { %s1988_s18 = scalar_lea.vmem %s1987_s30, 256 }
 0x6fc   : > { %v836_v9 = vpop.f32.mrf.mxu0 }
 0x6fe   : > { %v1612_v10 = vpop.f32.mrf.mxu0 }
 0x71f   : > { %v985_v13 = vpop.f32.mrf.mxu0 }
 0x720   : > { %1148 = vrot.lane.b32.xlu1 %v985_v13, %s2582_s20 }
 0x721   : > { %v1623_v15 = vpop.f32.mrf.mxu0 }
 0x723   : > { %v988_v16 = vpop.f32.mrf.mxu0 }
 0x725   : > { %v1624_v17 = vpop.f32.mrf.mxu0 }
 0x727   : > { %v1137_v18 = vpop.f32.mrf.mxu0 }
 0x728   : > { %1152 = vrot.lane.b32.xlu0 %v1137_v18, %s2089_s27 }
 0x729   : > { %v1635_v19 = vpop.f32.mrf.mxu0 }
 0x72b   : > { %v1140_v20 = vpop.f32.mrf.mxu0 }
 0x72d   : > { %v1636_v21 = vpop.f32.mrf.mxu0 }
 0x76b   : > { %v1145_v22 = vpop.permute.xlu0 %1144 }
 0x76c   : > { %v1155_v24 = vsel %vm578_vm3, %v681_v2, %v1145_v22 }
 0x792   : > { %v1149_v23 = vpop.permute.xlu1 %1148 }
 0x793   : > { %v1157_v25 = vsel %vm1156_vm5, %v1155_v24, %v1149_v23 }
 0x79a   : > { %v1153_v26 = vpop.permute.xlu0 %1152 }
 0x79b   : > { %v1159_v27 = vsel %vm1158_vm6, %v1157_v25, %v1153_v26 }
 0x79c   : > { %v1160_v28 = vpack.c.bf16 %v1159_v27, %v1159_v27 }
 0x79e   : > { %1642 = vmatmul.mubr.msk.bf16.vlgmr.msra.gmra.mxu1 %vm461_vm0, %v1160_v28 }
 0x79f   : > { %1661 = vmatprep.mubr.msk.bf16.mxu1 %vm2069_vm1, %v2068_v4  ;;  %1654 = vmatpush3.bf16.msra.mxu1 %v1798_v45 }
 0x7a0   : > { %1655 = vmatprep.subr.bf16.mxu1 %v2068_v4 }
 0x7a3   : > { %1656 = vmatpush3.bf16.msra.mxu1 %v1799_v46 }
 0x7a4   : > { %1657 = vmatprep.subr.bf16.mxu1 %v2068_v4 }
 0x7a7   : > { %1658 = vmatpush3.bf16.msra.mxu1 %v1800_v47 }
 0x7a8   : > { %1659 = vmatprep.subr.bf16.mxu1 %v2068_v4 }
 0x7ab   : > { %1660 = vmatpush3.bf16.msra.mxu1 %v1801_v48 }
 0x85e   : > { %v1210_v29 = vpop.f32.mrf.mxu1 }
 0x85f   : > { %v1216_v30 = vadd.f32 %v1210_v29, %v2288_v0 }
 0x860   : > { %v1643_v31 = vpop.f32.mrf.mxu1 }
 0x861   : > { %v1217_v32 = vmul.f32 %v1216_v30, %v1216_v30 }
 0x862   : > { %v1213_v33 = vpop.f32.mrf.mxu1 }
 0x863   : > { %v1218_v34 = vsel %vm461_vm0, %v1217_v32, 0.0 }
 0x864   : > { %1219 = vadd.xlane.f32.xlu1 %v1218_v34  ;;  %v1644_v35 = vpop.f32.mrf.mxu1 }
 0x8ed   : > { %v1220_v38 = vpop.xlane.xlu1 %1219 }
 0x8ee   : > { %v1221_v40 = vmul.f32 0.03125, %v1220_v38 }
 0x8f0   : > { %v1222_v41 = vadd.f32 1e-06, %v1221_v40 }
 0x8f2   : > { %1820 = vrsqrt.f32 %v1222_v41 }
 0x8ff   : > { %v1821_v42 = vpop.eup %1820 }
 0x900   : > { %v1224_v0 = vmul.f32 %v1821_v42, %v1216_v30 }
 0x902   : > { %v1231_v43 = vmul.f32 %v1537_v14, %v1224_v0 }
 0x904   : > { %v1232_v44 = vpack.c.bf16 %v1231_v43, %v1231_v43 }
 0x906   : > { %1650 = vmatmul.mubr.msk.bf16.vlgmr.msra.gmra.mxu0 %vm461_vm0, %v1232_v44 }
 0x9c6   : > { %v1282_v49 = vpop.f32.mrf.mxu0 }
 0x9c7   : > { %1296 = vrot.lane.b32.xlu0 %v1282_v49, %s2092_s12  ;;  %v1541_v52 = vmul.f32 -1.442695, %v1282_v49  ;;  %s1520_s12 = sshll.u32 %s426_s11, 3 }
 0x9c8   : > { %v1651_v50 = vpop.f32.mrf.mxu0  ;;  %s428_s20 = scalar_lea.vmem [#allocation13], %s1520_s12 }
 0x9c9   : > { %1822 = vpow2.f32 %v1541_v52  ;;  %s1385_s27 = sshll.u32 %s428_s20, 4  ;;  %s2506_s27 = int_to_ptr.vmem [resolvable:$true] %s1385_s27 }
 0x9ca   : > { %v1285_v51 = vpop.f32.mrf.mxu0  ;;  %s1982_s17 = scalar_lea.vmem %s2506_s27, 128  ;;  %p1989_p7 = scmp.lt.s32.totalorder %s2506_s27, %s1987_s30 }
 0x9cb   : > { %p1983_p2 = scmp.ne.s32.totalorder %s2506_s27, %s1982_s17  ;;  %p1990_p5 = scmp.lt.s32.totalorder %s1988_s18, %s1982_s17 }
 0x9cc   : > { %v1652_v39 = vpop.f32.mrf.mxu0 }
 0x9cd   : > { %p1984_p3 = pnand %p1983_p2, %p2583_p9  ;;  %p1991_p13 = por %p1990_p5, %p1989_p7 }
 0x9cf   : > { %p1985_p4 = pneg %p1984_p3 }
 0x9d1   : > { %p1992_p6 = pnand %p1991_p13, %p1985_p4 }
 0x9d6   : > { %v1823_v53 = vpop.eup %1822 }
 0x9d7   : > { %v1291_v54 = vadd.f32 1.0, %v1823_v53 }
 0x9d9   : > { %1824 = vrcp.f32 %v1291_v54 }
 0x9e6   : > { %v1825_v55 = vpop.eup %1824 }
 0x9e7   : > { %v1294_v4 = vmul.f32 %v1825_v55, %v1282_v49 }
 0xa39   : > { %v1297_v56 = vpop.permute.xlu0 %1296 }
 0xa3a   : > { %v1299_v57 = vmul.f32 %v1297_v56, %v1294_v4 }
 0xa3c   : > { %v1300_v58 = vpack.c.bf16 %v1299_v57, %v1299_v57 }
 0xa3e   : > { %1662 = vmatmul.mubr.msk.bf16.vlgmr.msra.gmra.mxu1 %vm1325_vm7, %v1300_v58 }
 0xafe   : > { %v1363_v59 = vpop.f32.mrf.mxu1 }
 0xaff   : > { %v1369_v60 = vadd.f32 %v1363_v59, %v1216_v30 }
 0xb00   : > { %v1663_v61 = vpop.f32.mrf.mxu1 }
 0xb01   : > { %1370 = vst.msk [vmem:[%s428_s20] sm:$0xff] %vm461_vm0, %v1369_v60 }
 0xb02   : > { %v1366_v62 = vpop.f32.mrf.mxu1 }
 0xb03   : > { %1995 = shalt.err (!%p1992_p6)
}
 0xb04   : > { %s1996_s12 = scalar_lea.hbm %s2504_s21, 128  ;;  %s2000_s20 = scalar_lea.hbm %s2556_s10, 256 }
 0xb05   : > { %p1997_p10 = scmp.ne.s32.totalorder %s2504_s21, %s1996_s12  ;;  %p2001_p11 = scmp.lt.s32.totalorder %s2504_s21, %s2556_s10 }
 0xb06   : > { %p2002_p0 = scmp.lt.s32.totalorder %s2000_s20, %s1996_s12 }
 0xb07   : > { %p1998_p8 = pnand %p1997_p10, %p2583_p9 }
 0xb08   : > { %p2003_p1 = por %p2002_p0, %p2001_p11 }
 0xb09   : > { %p1999_p12 = pneg %p1998_p8 }
 0xb0b   : > { %p2004_p2 = pnand %p2003_p1, %p1999_p12 }
 0xb0d   : > { %2007 = shalt.err (!%p2004_p2)
}
 0xb0e   : > { %1689 = dma.vmem_to_hbm [thread:$0]  (%p2583_p9), %s2506_s27, 128, %s2504_s21, %s1372_s29   ;;  %v1664_v63 = vpop.f32.mrf.mxu1 }
 0xb0f PF: > { %p1726_p3 = scmp.ge.s32.totalorder %s2058_s16, 2  ;;  %s1397_s17 = sand.u32 1, %s2046_s13  }
 0xb10   : > { %p2584_p4 = scmp.ne.s32.totalorder %s2566_s24, 0  ;;  %s1398_s25 = scalar_lea.sflag [#allocation4], %s1397_s17 }
 0xb12   : > { %p1711_p7 = pnand %p1726_p3, %p2584_p4 }
 0xb14   : > { %p1712_p5 = pneg %p1711_p7 }
 0xb16   : > { %2041 = dma.done.wait (%p1712_p5), %s1398_s25, 128  }
 0xb17   : > { %2043 = vsyncadd (%p1712_p5), %s1398_s25, 4294967168  ;;  %s2585_s23 = sld [smem:[#allocation19_spill]]  ;;  %p24_p13 = scmp.ge.s32.totalorder %s2174_s19, 4  }
 0xb18   : > { %s2586_s13 = smov %s2050_s14  ;;  %s2587_s14 = smov %s2054_s15 }
 0xb19   : > { %s2589_s16 = smov %s2174_s19  ;;  %26 = sbr.rel (!%p24_p13) target bundleno = 7 (0x7), region = 120 }
 0xb1d   : > { %s2588_s15 = smov %s2585_s23 }
 0xb1e   :  { %1403 = vsyncpa [#allocation3], 1 }
 0xb1f   :  { %1405 = vsyncpa [#allocation3 + $0x1], 1 }
 0xb20   :  { %1406 = vsyncpa [#allocation6], 1 }
 0xb21   :  { %1407 = vsyncpa [#allocation9], 1 }
 0xb22   :  { %1408 = vsyncpa [#allocation12], 1 }
 0xb23   :  { %1409 = vsyncpa [#allocation4], 1 }
 0xb24   :  { %1411 = vsyncpa [#allocation4 + $0x1], 1 }

// kernel: tpu_custom_call.1
= control target key start
LH: loop header
LB: loop body
LE: loop exit
PB: predicated region body
PF: predicated region fallthrough
CT: control target
= control target key end

     0   :  { %15 = vsyncpa [#allocation3], 0  ;;  %s2546_s0 = inlined_call_operand.hbm [shape: f32[8,8], index: 0, kind: input, shape index: {}]   ;;  %s2547_s1 = inlined_call_operand.hbm [shape: f32[8,8], index: 1, kind: input, shape index: {}]   ;;  %s2548_s2 = inlined_call_operand.hbm [shape: f32[8,8], index: 2, kind: input, shape index: {}]   ;;  %s2549_s3 = inlined_call_operand.vmem [shape: f32[2,8,32], index: 3, kind: input, shape index: {}]   ;;  %s2550_s4 = inlined_call_operand.hbm [shape: f32[1,32], index: 4, kind: input, shape index: {}]   ;;  %s2551_s5 = inlined_call_operand.vmem [shape: bf16[32,96], index: 5, kind: input, shape index: {}]   ;;  %s2552_s6 = inlined_call_operand.vmem [shape: bf16[32,32], index: 6, kind: input, shape index: {}]   ;;  %s2553_s7 = inlined_call_operand.hbm [shape: f32[1,32], index: 7, kind: input, shape index: {}]   ;;  %s2554_s8 = inlined_call_operand.hbm [shape: bf16[32,128], index: 8, kind: input, shape index: {}]   ;;  %s2555_s9 = inlined_call_operand.vmem [shape: bf16[64,32], index: 9, kind: input, shape index: {}]   ;;  %s2556_s10 = inlined_call_operand.hbm [shape: f32[2,8,32], index: 10, kind: output, shape index: {}]  }
   0x1   :  { %16 = vsyncpa [#allocation6], 0 }
   0x2   :  { %17 = vsyncpa [#allocation9], 0 }
   0x3   :  { %18 = vsyncpa [#allocation12], 0 }
   0x4   :  { %19 = vsyncpa [#allocation4], 0 }
   0x5   :  { %21 = vsyncpa [#allocation4 + $0x1], 0  ;;  %s2149_s13 = smov 0   ;;  %s2151_s14 = smov 0  }
   0x6   :  { %s2153_s15 = smov 0   ;;  %s2155_s16 = smov 0  }
   0x7 LB: > { %s2170_s17 = sadd.s32 4294967295, %s2058_s16   ;;  %s1504_s18 = sadd.s32 4294967294, %s2058_s16   ;;  %s2058_s16 = sphi %s2155_s16, %s2589_s16   ;;  %s2054_s15 = sphi %s2153_s15, %s2588_s15   ;;  %s2050_s14 = sphi %s2151_s14, %s2587_s14   ;;  %s2046_s13 = sphi %s2149_s13, %s2586_s13  }
   0x8   : > { %s2174_s19 = sadd.s32 1, %s2058_s16   ;;  %s249_s20 = sadd.s32 1, %s2054_s15 }
   0x9   : > { %s246_s21 = ssub.s32 %s2058_s16, %s2174_s19  ;;  %p259_p0 = scmp.ne.s32.totalorder %s2054_s15, %s2050_s14 }
   0xa   : > { %p247_p1 = scmp.eq.s32.totalorder %s246_s21, 0  ;;  %p260_p2 = scmp.eq.s32.totalorder %s2170_s17, 1 }
   0xb   : > { %p265_p3 = scmp.ne.s32.totalorder %s2050_s14, %s2046_s13  ;;  %p266_p4 = scmp.eq.s32.totalorder %s1504_s18, 1 }
   0xc   : > { %s2185_s22 = scalar_select %p247_p1, %s2054_s15, %s249_s20  }
   0xd   : > { %p2187_p5 = por %p260_p2, %p259_p0  ;;  %p2191_p6 = por %p266_p4, %p265_p3 }
   0xe   : > { %2564 = sst [smem:[#allocation19_spill]] %s2185_s22  ;;  %p1505_p7 = scmp.ge.s32.totalorder %s2058_s16, 1 }
   0xf   : > { %s2565_s23 = scalar_select %p2187_p5, 1, 0 }
  0x10   : > { %s2566_s24 = scalar_select %p2191_p6, 1, 0 }
  0x11   : > { %p273_p8 = scmp.lt.s32.totalorder %s2058_s16, 3  ;;  %p2557_p9 = scmp.eq.s32.totalorder %s2170_s17, 0 }
  0x12   : > { %s2060_s26 = smov [#allocation5]   ;;  %s2061_s28 = smov [#allocation8]  }
  0x13   : > { %p2198_p10 = pnand %p1505_p7, %p273_p8  ;;  %s297_s27 = sshll.u32 %s2060_s26, 4  ;;  %s298_s27 = int_to_ptr.vmem [resolvable:$true] %s297_s27 }
  0x14   : > { %s319_s29 = sshll.u32 %s2061_s28, 4  ;;  %s2062_s11 = smov [#allocation2]   ;;  %s320_s29 = int_to_ptr.vmem [resolvable:$true] %s319_s29 }
  0x15   : > { %s2567_s25 = scalar_select %p2198_p10, 1, 0 }
  0x16   : > { %p1691_p11 = pneg %p2198_p10  ;;  %s286_s12 = sshll.u32 %s2062_s11, 4  ;;  %s2210_s12 = int_to_ptr.vmem [resolvable:$true] %s286_s12 }
  0x17   : > { %s1837_s20 = scalar_lea.vmem %s298_s27, 128  ;;  %p1845_p3 = scmp.lt.s32.totalorder %s298_s27, %s298_s27 }
  0x18   : > { %p2206_p12 = pnand %p2557_p9, %p1691_p11  ;;  %p1838_p0 = scmp.ne.s32.totalorder %s298_s27, %s1837_s20 }
  0x19   : > { %p1846_p4 = scmp.lt.s32.totalorder %s1837_s20, %s1837_s20 }
  0x1a   : > { %p2214_p13 = pneg %p2206_p12 }
  0x1b   : > { %p1847_p7 = por %p1846_p4, %p1845_p3 }
  0x1c   : > { %p1840_p1 = pnand %p1838_p0, %p2214_p13 }
  0x1e   : > { %p1841_p2 = pneg %p1840_p1 }
  0x20   : > { %p1848_p8 = pnand %p1847_p7, %p1841_p2 }
  0x22   : > { %1851 = shalt.err (!%p1848_p8)
}
  0x23   : > { %1697 = dma.hbm_to_vmem [thread:$0]  (!%p2206_p12), %s2547_s1, 128, %s298_s27, [#allocation6]  }
  0x24   : > { %s1863_s28 = scalar_lea.vmem %s320_s29, 16  ;;  %s1870_s11 = scalar_lea.vmem %s320_s29, 32 }
  0x25   : > { %p1864_p11 = scmp.ne.s32.totalorder %s320_s29, %s1863_s28  ;;  %p1871_p0 = scmp.lt.s32.totalorder %s320_s29, %s320_s29 }
  0x26   : > { %p1872_p1 = scmp.lt.s32.totalorder %s1870_s11, %s1863_s28 }
  0x27   : > { %p1866_p9 = pnand %p1864_p11, %p2214_p13 }
  0x28   : > { %p1873_p5 = por %p1872_p1, %p1871_p0 }
  0x29   : > { %p1867_p6 = pneg %p1866_p9 }
  0x2b   : > { %p1874_p10 = pnand %p1873_p5, %p1867_p6 }
  0x2d   : > { %1877 = shalt.err (!%p1874_p10)
}
  0x2e   : > { %1703 = dma.hbm_to_vmem [thread:$0]  (!%p2206_p12), %s2550_s4, 16, %s320_s29, [#allocation9]  }
  0x2f   : > { %s1889_s27 = scalar_lea.vmem %s2210_s12, 128  ;;  %p1897_p4 = scmp.lt.s32.totalorder %s2210_s12, %s2210_s12 }
  0x30   : > { %p1890_p2 = scmp.ne.s32.totalorder %s2210_s12, %s1889_s27  ;;  %p1898_p7 = scmp.lt.s32.totalorder %s1889_s27, %s1889_s27 }
  0x32   : > { %p1892_p9 = pnand %p1890_p2, %p2214_p13  ;;  %p1899_p5 = por %p1898_p7, %p1897_p4 }
  0x34   : > { %p1893_p3 = pneg %p1892_p9 }
  0x36   : > { %p1900_p6 = pnand %p1899_p5, %p1893_p3 }
  0x38   : > { %1903 = shalt.err (!%p1900_p6)
}
  0x39   : > { %1694 = dma.hbm_to_vmem [thread:$0]  (!%p2206_p12), %s2546_s0, 128, %s2210_s12, [#allocation3]  }
  0x3a   : > { %s2063_s29 = smov [#allocation7]   ;;  %s2064_s28 = smov [#allocation10]  }
  0x3b   : > { %s308_s26 = sshll.u32 %s2063_s29, 4  ;;  %s336_s11 = sshll.u32 %s2064_s28, 4  ;;  %s309_s26 = int_to_ptr.vmem [resolvable:$true] %s308_s26  ;;  %s337_s11 = int_to_ptr.vmem [resolvable:$true] %s336_s11 }
  0x3c   : > { %s1915_s20 = scalar_lea.vmem %s309_s26, 128  ;;  %p1923_p0 = scmp.lt.s32.totalorder %s309_s26, %s309_s26 }
  0x3d   : > { %p1916_p10 = scmp.ne.s32.totalorder %s309_s26, %s1915_s20  ;;  %p1924_p1 = scmp.lt.s32.totalorder %s1915_s20, %s1915_s20 }
  0x3f   : > { %p1918_p8 = pnand %p1916_p10, %p2214_p13  ;;  %p1925_p2 = por %p1924_p1, %p1923_p0 }
  0x41   : > { %p1919_p11 = pneg %p1918_p8 }
  0x43   : > { %p1926_p9 = pnand %p1925_p2, %p1919_p11 }
  0x45   : > { %1929 = shalt.err (!%p1926_p9)
}
  0x46   : > { %1700 = dma.hbm_to_vmem [thread:$0]  (!%p2206_p12), %s2548_s2, 128, %s309_s26, [#allocation6]  }
  0x47   : > { %s1941_s12 = scalar_lea.vmem %s337_s11, 16  ;;  %s1948_s21 = scalar_lea.vmem %s337_s11, 32 }
  0x48   : > { %p1942_p3 = scmp.ne.s32.totalorder %s337_s11, %s1941_s12  ;;  %p1949_p5 = scmp.lt.s32.totalorder %s337_s11, %s337_s11 }
  0x49   : > { %p1950_p6 = scmp.lt.s32.totalorder %s1948_s21, %s1941_s12 }
  0x4a   : > { %p1944_p4 = pnand %p1942_p3, %p2214_p13 }
  0x4b   : > { %p1951_p10 = por %p1950_p6, %p1949_p5 }
  0x4c   : > { %p1945_p7 = pneg %p1944_p4 }
  0x4e   : > { %p1952_p8 = pnand %p1951_p10, %p1945_p7 }
  0x50   : > { %1955 = shalt.err (!%p1952_p8)
}
  0x51   : > { %1706 = dma.hbm_to_vmem [thread:$0]  (!%p2206_p12), %s2553_s7, 16, %s337_s11, [#allocation9]  }
  0x52   : > { %s2065_s26 = smov [#allocation11]  }
  0x53   : > { %s346_s20 = sshll.u32 %s2065_s26, 4  ;;  %s347_s20 = int_to_ptr.vmem [resolvable:$true] %s346_s20 }
  0x54   : > { %s1967_s27 = scalar_lea.vmem %s347_s20, 256  ;;  %p1975_p2 = scmp.lt.s32.totalorder %s347_s20, %s347_s20 }
  0x55   : > { %p1968_p11 = scmp.ne.s32.totalorder %s347_s20, %s1967_s27  ;;  %p1976_p9 = scmp.lt.s32.totalorder %s1967_s27, %s1967_s27 }
  0x57   : > { %p1970_p0 = pnand %p1968_p11, %p2214_p13  ;;  %p1977_p3 = por %p1976_p9, %p1975_p2 }
  0x59   : > { %p1971_p1 = pneg %p1970_p0 }
  0x5b   : > { %p1978_p4 = pnand %p1977_p3, %p1971_p1 }
  0x5d   : > { %1981 = shalt.err (!%p1978_p4)
}
  0x5e   : > { %s2066_s22 = smov 64   ;;  %s2067_s12 = smov 4  }
  0x5f   : > { %1709 = dma.hbm_to_vmem [thread:$0]  (!%p2206_p12), %s2554_s8, 256, %s347_s20, [#allocation12], %s2066_s22, %s2066_s22, %s2067_s12  }
  0x60   : > { %p2570_p7 = scmp.ne.s32.totalorder %s2567_s25, 0 }
  0x61   : > { %p2571_p5 = scmp.eq.s32.totalorder (!%p2570_p7), %s2170_s17, 0 }
  0x62   : > { %372 = sbr.rel (%p2570_p7) target bundleno = 2831 (0xb0f), region = 60 }
  0x67   : > { %2025 = dma.done.wait (%p2571_p5), [#allocation3], 128   ;;  %p2572_p13 = pmov %p2571_p5 }
  0x68   : > { %p2573_p6 = pmov %p2571_p5 }
  0x69   : > { %2027 = vsyncadd (%p2572_p13), [#allocation3], 4294967168 }
  0x6a   : > { %2029 = dma.done.wait (%p2573_p6), [#allocation6], 256   ;;  %p2574_p10 = pmov %p2571_p5 }
  0x6b   : > { %p2575_p8 = pmov %p2571_p5 }
  0x6c   : > { %2031 = vsyncadd (%p2574_p10), [#allocation6], 4294967040 }
  0x6d   : > { %2033 = dma.done.wait (%p2575_p8), [#allocation9], 32   ;;  %p2576_p12 = pmov %p2571_p5 }
  0x6e   : > { %p2577_p11 = pmov %p2571_p5 }
  0x6f   : > { %2035 = vsyncadd (%p2576_p12), [#allocation9], 4294967264 }
  0x70   : > { %2037 = dma.done.wait (%p2577_p11), [#allocation12], 256   ;;  %p2578_p0 = pmov %p2571_p5 }
  0x71   : > { %p429_p1 = scmp.lt.s32.totalorder %s2170_s17, 1  ;;  %vm461_vm0 = vcmask 261120   ;;  %v1792_v3 = vld [vmem:[%s2551_s5 + $0x8] sm:$0xff]   ;;  %v2068_v4 = vmov 0.0   ;;  %vm2069_vm1 = vmmov 0   ;;  %v1793_v5 = vld [vmem:[%s2551_s5] sm:$0xff]  }
  0x72   : > { %2039 = vsyncadd (%p2578_p0), [#allocation12], 4294967040  ;;  %1581 = vmatprep.subr.bf16.mxu0 %v2068_v4  ;;  %1585 = vmatprep.mubr.msk.bf16.mxu0 %vm2069_vm1, %v2068_v4  ;;  %v1522_v10 = vld [vmem:[#allocation8] ss:$0 sm:$0xff]  ;;  %s2070_s12 = smov 88   ;;  %s2071_s21 = smov 96  }
  0x73   : > { %s430_s25 = scalar_select %p429_p1, %s2170_s17, 1  ;;  %1582 = vmatpush3.bf16.msra.mxu0 %v1792_v3  ;;  %1589 = vmatprep.subr.bf16.mxu1 %v2068_v4  ;;  %v437_v25 = vld [vmem:[#allocation7] sm:$0xff]  ;;  %vm534_vm2 = vcmask 1047616   ;;  %v2360_v39 = vld [vmem:[#allocation5] sm:$0xff]  ;;  %vm578_vm3 = vcmask 64512   ;;  %vm643_vm4 = vcmask 1043456  }
  0x74   : > { %1583 = vmatprep.subr.bf16.mxu0 %v2068_v4  ;;  %1591 = vmatprep.mubr.msk.bf16.mxu1 %vm2069_vm1, %v2068_v4  ;;  %s2072_s29 = smov 120   ;;  %s2075_s18 = smov 72   ;;  %vm1156_vm5 = vcmask 130048   ;;  %vm1158_vm6 = vcmask 195584   ;;  %vm1325_vm7 = vcmask 523264  }
  0x75   : > { %s1521_s30 = sshll.u32 %s430_s25, 3  ;;  %s2073_s25 = smov 80  }
  0x76   : > { %s432_s28 = scalar_lea.vmem %s2549_s3, %s1521_s30  ;;  %s2074_s30 = smov 112  }
  0x77   : > { %v2288_v0 = vld [vmem:[%s432_s28] sm:$0xff]  ;;  %1584 = vmatpush3.bf16.msra.mxu0 %v1793_v5  ;;  %s2076_s11 = smov 104   ;;  %s2561_s28 = smov 8  }
  0x78   : > { %v460_v1 = vmul.f32 %v2288_v0, %v2288_v0  ;;  %1595 = vmatprep.subr.bf16.mxu0 %v2068_v4  ;;  %s2078_s26 = smov 4   ;;  %s2079_s20 = smov 32  }
  0x79   : > { %s2080_s27 = smov 28   ;;  %s2560_s22 = smov 40  }
  0x7a   : > { %v462_v2 = vsel %vm461_vm0, %v460_v1, 0.0  ;;  %p2583_p9 = scmp.ne.s32.totalorder %s2565_s23, 0 }
  0x7b   : > { %463 = vadd.xlane.f32.xlu0 %v462_v2 }
 0x104   : > { %v464_v6 = vpop.xlane.xlu0 %463 }
 0x105   : > { %v466_v7 = vmul.f32 0.03125, %v464_v6 }
 0x107   : > { %v467_v8 = vadd.f32 1e-06, %v466_v7 }
 0x109   : > { %1802 = vrsqrt.f32 %v467_v8 }
 0x116   : > { %v1803_v9 = vpop.eup %1802 }
 0x117   : > { %v469_v11 = vmul.f32 %v1803_v9, %v2288_v0 }
 0x119   : > { %v476_v12 = vmul.f32 %v1522_v10, %v469_v11 }
 0x11b   : > { %v477_v13 = vpack.c.bf16 %v476_v12, %v476_v12 }
 0x11d   : > { %1586 = vmatmul.mubr.msk.bf16.vlgmr.msra.gmra.mxu0 %vm461_vm0, %v477_v13 }
 0x11e   : > { %1597 = vmatprep.mubr.msk.bf16.mxu0 %vm2069_vm1, %v2068_v4 }
 0x1dd   : > { %v2311_v14 = vpop.f32.mrf.mxu0 }
 0x1de   : > { %711 = vrot.lane.b32.xlu1 %v2311_v14, %s2070_s12  ;;  %558 = vrot.lane.b32.xlu0 %v2311_v14, %s2071_s21 }
 0x1df   : > { %v1587_v15 = vpop.f32.mrf.mxu0 }
 0x1e1   : > { %v530_v16 = vpop.f32.mrf.mxu0 }
 0x1e2   : > { %691 = vrot.lane.b32.xlu1 %v2311_v14, %s2072_s29 }
 0x1e3   : > { %v1588_v17 = vpop.f32.mrf.mxu0 }
 0x1e6   : > { %863 = vrot.lane.b32.xlu1 %v2311_v14, %s2073_s25 }
 0x1ea   : > { %843 = vrot.lane.b32.xlu1 %v2311_v14, %s2074_s30 }
 0x1ee   : > { %1015 = vrot.lane.b32.xlu1 %v2311_v14, %s2075_s18 }
 0x1f2   : > { %995 = vrot.lane.b32.xlu1 %v2311_v14, %s2076_s11 }
 0x250   : > { %v712_v18 = vpop.permute.xlu1 %711  ;;  %v559_v19 = vpop.permute.xlu0 %558 }
 0x251   : > { %714 = vrot.lane.b32.xlu0 %v712_v18, %s2561_s28  ;;  %561 = vrot.lane.b32.xlu1 %v559_v19, %s2561_s28 }
 0x254   : > { %v692_v20 = vpop.permute.xlu1 %691 }
 0x255   : > { %694 = vrot.lane.b32.xlu1 %v692_v20, %s2561_s28 }
 0x258   : > { %v864_v21 = vpop.permute.xlu1 %863 }
 0x259   : > { %866 = vrot.lane.b32.xlu0 %v864_v21, %s2561_s28 }
 0x25c   : > { %v2331_v22 = vpop.permute.xlu1 %843 }
 0x25d   : > { %846 = vrot.lane.b32.xlu1 %v2331_v22, %s2561_s28 }
 0x260   : > { %v2335_v23 = vpop.permute.xlu1 %1015 }
 0x261   : > { %1018 = vrot.lane.b32.xlu0 %v2335_v23, %s2561_s28 }
 0x264   : > { %v2339_v24 = vpop.permute.xlu1 %995 }
 0x265   : > { %998 = vrot.lane.b32.xlu1 %v2339_v24, %s2561_s28 }
 0x269   : > { %542 = vrot.lane.b32.xlu1 %v437_v25, %s2078_s26 }
 0x2c3   : > { %v715_v26 = vpop.permute.xlu0 %714  ;;  %v562_v27 = vpop.permute.xlu1 %561 }
 0x2c4   : > { %v716_v28 = vsel %vm534_vm2, %v715_v26, %v712_v18  ;;  %v563_v29 = vsel %vm534_vm2, %v562_v27, %v559_v19 }
 0x2c5   : > { %717 = vrot.lane.b32.xlu1 %v716_v28, %s2561_s28  ;;  %564 = vrot.lane.b32.xlu0 %v563_v29, %s2561_s28 }
 0x2c7   : > { %v695_v30 = vpop.permute.xlu1 %694 }
 0x2c8   : > { %v696_v33 = vsel %vm534_vm2, %v695_v30, %v692_v20 }
 0x2c9   : > { %535 = vrot.lane.b32.xlu0 %v2311_v14, %s2561_s28 }
 0x2cb   : > { %v867_v31 = vpop.permute.xlu0 %866 }
 0x2cc   : > { %v868_v32 = vsel %vm534_vm2, %v867_v31, %v864_v21 }
 0x2cd   : > { %869 = vrot.lane.b32.xlu1 %v868_v32, %s2561_s28  ;;  %697 = vrot.lane.b32.xlu0 %v696_v33, %s2561_s28 }
 0x2cf   : > { %v847_v34 = vpop.permute.xlu1 %846 }
 0x2d0   : > { %v848_v35 = vsel %vm534_vm2, %v847_v34, %v2331_v22 }
 0x2d1   : > { %849 = vrot.lane.b32.xlu0 %v848_v35, %s2561_s28 }
 0x2d3   : > { %v1019_v36 = vpop.permute.xlu0 %1018 }
 0x2d4   : > { %v1020_v37 = vsel %vm534_vm2, %v1019_v36, %v2335_v23 }
 0x2d5   : > { %1021 = vrot.lane.b32.xlu1 %v1020_v37, %s2561_s28 }
 0x2d7   : > { %v999_v38 = vpop.permute.xlu1 %998 }
 0x2d8   : > { %v1000_v40 = vsel %vm534_vm2, %v999_v38, %v2339_v24 }
 0x2d9   : > { %553 = vrot.lane.b32.xlu1 %v2360_v39, %s2079_s20  ;;  %1001 = vrot.lane.b32.xlu0 %v1000_v40, %s2561_s28  ;;  %s2082_s20 = smov 36  }
 0x2db   : > { %v543_v41 = vpop.permute.xlu1 %542 }
 0x337   : > { %v565_v42 = vpop.permute.xlu0 %564  ;;  %v718_v45 = vpop.permute.xlu1 %717 }
 0x338   : > { %v566_v43 = vsel %vm534_vm2, %v565_v42, %v559_v19  ;;  %v719_v47 = vsel %vm534_vm2, %v718_v45, %v712_v18  ;;  %v533_v45 = vmul.f32 %v2311_v14, %v2360_v39 }
 0x339   : > { %v567_v44 = vmul.f32 %v566_v43, %v543_v41  ;;  %v720_v49 = vmul.f32 %v719_v47, %v543_v41 }
 0x33b   : > { %v536_v46 = vpop.permute.xlu0 %535  ;;  %569 = vrot.lane.b32.xlu0 %v567_v44, %s2080_s27  ;;  %s2562_s27 = smov 48  }
 0x33c   : > { %v537_v48 = vsel %vm534_vm2, %v536_v46, %v2311_v14 }
 0x33d   : > { %538 = vrot.lane.b32.xlu1 %v537_v48, %s2561_s28 }
 0x33f   : > { %v698_v50 = vpop.permute.xlu0 %697  ;;  %707 = vrot.lane.b32.xlu0 %v2360_v39, %s2560_s22  ;;  %v870_v51 = vpop.permute.xlu1 %869  ;;  %s2084_s22 = smov 44  }
 0x340   : > { %v699_v52 = vsel %vm534_vm2, %v698_v50, %v692_v20  ;;  %v871_v53 = vsel %vm534_vm2, %v870_v51, %v864_v21 }
 0x341   : > { %722 = vrot.lane.b32.xlu1 %v720_v49, %s2082_s20  ;;  %v700_v54 = vmul.f32 %v699_v52, %v543_v41  ;;  %v872_v55 = vmul.f32 %v871_v53, %v543_v41  ;;  %s2563_s20 = smov 16  }
 0x343   : > { %687 = vrot.lane.b32.xlu0 %v2360_v39, %s2561_s28  ;;  %v850_v56 = vpop.permute.xlu0 %849  ;;  %s2086_s28 = smov 56  }
 0x344   : > { %v851_v58 = vsel %vm534_vm2, %v850_v56, %v2331_v22 }
 0x345   : > { %859 = vrot.lane.b32.xlu1 %v2360_v39, %s2562_s27  ;;  %v852_v60 = vmul.f32 %v851_v58, %v543_v41  ;;  %s2089_s27 = smov 24  }
 0x347   : > { %702 = vrot.lane.b32.xlu0 %v700_v54, %s2078_s26  ;;  %v1022_v57 = vpop.permute.xlu1 %1021  ;;  %s2087_s26 = smov 12  }
 0x348   : > { %v1023_v59 = vsel %vm534_vm2, %v1022_v57, %v2335_v23  ;;  %v435_v57 = vld [vmem:[#allocation2] sm:$0xff] }
 0x349   : > { %874 = vrot.lane.b32.xlu1 %v872_v55, %s2084_s22  ;;  %v1024_v62 = vmul.f32 %v1023_v59, %v543_v41  ;;  %s2088_s22 = smov 52  }
 0x34b   : > { %839 = vrot.lane.b32.xlu0 %v2360_v39, %s2563_s20  ;;  %v1002_v61 = vpop.permute.xlu0 %1001  ;;  %s2090_s20 = smov 20   ;;  %v554_v2 = vpop.permute.xlu1 %553 }
 0x34c   : > { %v1003_v63 = vsel %vm534_vm2, %v1002_v61, %v2339_v24  ;;  %v556_v3 = vmul.f32 %v554_v2, %v2311_v14 }
 0x34d   : > { %1011 = vrot.lane.b32.xlu1 %v2360_v39, %s2086_s28  ;;  %v1004_v1 = vmul.f32 %v1003_v63, %v543_v41 }
 0x34f   : > { %854 = vrot.lane.b32.xlu0 %v852_v60, %s2087_s26  ;;  %s2091_s26 = smov 124  }
 0x351   : > { %1026 = vrot.lane.b32.xlu1 %v1024_v62, %s2088_s22 }
 0x353   : > { %991 = vrot.lane.b32.xlu0 %v2360_v39, %s2089_s27 }
 0x355   : > { %1006 = vrot.lane.b32.xlu1 %v1004_v1, %s2090_s20  ;;  %s2582_s20 = smov 16  }
 0x3ad   : > { %v570_v5 = vpop.permute.xlu0 %569 }
 0x3ae   : > { %v572_v6 = vadd.f32 %v570_v5, %v556_v3 }
 0x3af   : > { %v539_v7 = vpop.permute.xlu1 %538 }
 0x3b0   : > { %v573_v8 = vpack.c.bf16 %v572_v6, %v572_v6  ;;  %v540_v9 = vsel %vm534_vm2, %v539_v7, %v2311_v14 }
 0x3b1   : > { %v545_v10 = vmul.f32 %v543_v41, %v540_v9  ;;  %v708_v11 = vpop.permute.xlu0 %707 }
 0x3b2   : > { %v710_v12 = vmul.f32 %v708_v11, %v2311_v14  ;;  %576 = vrot.lane.b32.xlu0 %v573_v8, %s2071_s21  ;;  %s2579_s21 = smov 48  }
 0x3b3   : > { %547 = vrot.lane.b32.xlu1 %v545_v10, %s2091_s26  ;;  %v723_v13 = vpop.permute.xlu1 %722 }
 0x3b4   : > { %v725_v15 = vadd.f32 %v723_v13, %v710_v12 }
 0x3b5   : > { %v688_v16 = vpop.permute.xlu0 %687 }
 0x3b6   : > { %v726_v17 = vpack.c.bf16 %v725_v15, %v725_v15  ;;  %v690_v19 = vmul.f32 %v688_v16, %v2311_v14 }
 0x3b7   : > { %v860_v18 = vpop.permute.xlu1 %859 }
 0x3b8   : > { %731 = vrot.lane.b32.xlu0 %v726_v17, %s2070_s12  ;;  %v862_v21 = vmul.f32 %v860_v18, %v2311_v14  ;;  %s2092_s12 = smov 64  }
 0x3b9   : > { %v703_v20 = vpop.permute.xlu0 %702 }
 0x3ba   : > { %v705_v22 = vadd.f32 %v703_v20, %v690_v19 }
 0x3bb   : > { %v875_v23 = vpop.permute.xlu1 %874 }
 0x3bc   : > { %v706_v24 = vpack.c.bf16 %v705_v22, %v705_v22  ;;  %v877_v25 = vadd.f32 %v875_v23, %v862_v21 }
 0x3bd   : > { %v840_v26 = vpop.permute.xlu0 %839 }
 0x3be   : > { %v878_v27 = vpack.c.bf16 %v877_v25, %v877_v25  ;;  %728 = vrot.lane.b32.xlu1 %v706_v24, %s2072_s29  ;;  %v842_v29 = vmul.f32 %v840_v26, %v2311_v14  ;;  %s2580_s29 = smov 40  }
 0x3bf   : > { %v1012_v28 = vpop.permute.xlu1 %1011 }
 0x3c0   : > { %883 = vrot.lane.b32.xlu0 %v878_v27, %s2073_s25  ;;  %v1014_v31 = vmul.f32 %v1012_v28, %v2311_v14  ;;  %s2581_s25 = smov 8  }
 0x3c1   : > { %v855_v30 = vpop.permute.xlu0 %854 }
 0x3c2   : > { %v857_v32 = vadd.f32 %v855_v30, %v842_v29 }
 0x3c3   : > { %v1027_v33 = vpop.permute.xlu1 %1026 }
 0x3c4   : > { %v858_v34 = vpack.c.bf16 %v857_v32, %v857_v32  ;;  %v1029_v35 = vadd.f32 %v1027_v33, %v1014_v31 }
 0x3c5   : > { %v992_v36 = vpop.permute.xlu0 %991 }
 0x3c6   : > { %v1030_v37 = vpack.c.bf16 %v1029_v35, %v1029_v35  ;;  %v994_v38 = vmul.f32 %v992_v36, %v2311_v14  ;;  %880 = vrot.lane.b32.xlu1 %v858_v34, %s2074_s30  ;;  %v574_v35 = vpack.c.bf16 %v2311_v14, %v2311_v14 }
 0x3c7   : > { %v1007_v40 = vpop.permute.xlu1 %1006 }
 0x3c8   : > { %v1009_v41 = vadd.f32 %v1007_v40, %v994_v38  ;;  %1035 = vrot.lane.b32.xlu0 %v1030_v37, %s2075_s18 }
 0x3ca   : > { %v1010_v42 = vpack.c.bf16 %v1009_v41, %v1009_v41 }
 0x3cc   : > { %1032 = vrot.lane.b32.xlu1 %v1010_v42, %s2076_s11  ;;  %s426_s11 = sand.u32 1, %s2050_s14  }
 0x424   : > { %v577_v43 = vpop.permute.xlu0 %576 }
 0x425   : > { %v548_v44 = vpop.permute.xlu1 %547  ;;  %v583_v46 = vsel %vm578_vm3, %v577_v43, 0 }
 0x426   : > { %1590 = vmatpush3.bf16.xpose.msra.mxu1 %v583_v46  ;;  %v550_v47 = vadd.f32 %v548_v44, %v533_v45 }
 0x427   : > { %1601 = vmatprep.subr.bf16.mxu1 %v2068_v4 }
 0x428   : > { %v551_v49 = vpack.c.bf16 %v550_v47, %v550_v47 }
 0x42a   : > { %v732_v48 = vpop.permute.xlu0 %731 }
 0x42b   : > { %v737_v50 = vsel %vm578_vm3, %v732_v48, 0 }
 0x42d   : > { %1592 = vmatmul.mubr.msk.bf16.vlgmr.msra.gmra.mxu1 %vm578_vm3, %v551_v49 }
 0x42e   : > { %1602 = vmatpush3.bf16.xpose.msra.mxu1 %v737_v50  ;;  %1603 = vmatprep.mubr.msk.bf16.mxu1 %vm2069_vm1, %v2068_v4 }
 0x42f   : > { %1613 = vmatprep.subr.bf16.mxu1 %v2068_v4 }
 0x430   : > { %v729_v39 = vpop.permute.xlu1 %728 }
 0x432   : > { %v884_v51 = vpop.permute.xlu0 %883 }
 0x433   : > { %v889_v52 = vsel %vm578_vm3, %v884_v51, 0 }
 0x435   : > { %1604 = vmatmul.mubr.msk.bf16.vlgmr.msra.gmra.mxu1 %vm578_vm3, %v729_v39 }
 0x436   : > { %1614 = vmatpush3.bf16.xpose.msra.mxu1 %v889_v52  ;;  %1615 = vmatprep.mubr.msk.bf16.mxu1 %vm2069_vm1, %v2068_v4 }
 0x437   : > { %1625 = vmatprep.subr.bf16.mxu1 %v2068_v4 }
 0x438   : > { %v881_v54 = vpop.permute.xlu1 %880 }
 0x43a   : > { %v1036_v53 = vpop.permute.xlu0 %1035 }
 0x43b   : > { %v1041_v55 = vsel %vm578_vm3, %v1036_v53, 0 }
 0x43d   : > { %1616 = vmatmul.mubr.msk.bf16.vlgmr.msra.gmra.mxu1 %vm578_vm3, %v881_v54 }
 0x43e   : > { %1626 = vmatpush3.bf16.xpose.msra.mxu1 %v1041_v55  ;;  %1627 = vmatprep.mubr.msk.bf16.mxu1 %vm2069_vm1, %v2068_v4  ;;  %v1033_v56 = vpop.permute.xlu1 %1032 }
 0x43f   : > { %1637 = vmatprep.subr.bf16.mxu1 %v2068_v4 }
 0x445   : > { %1628 = vmatmul.mubr.msk.bf16.vlgmr.msra.gmra.mxu1 %vm578_vm3, %v1033_v56 }
 0x446   : > { %1641 = vmatprep.mubr.msk.bf16.mxu1 %vm2069_vm1, %v2068_v4 }
 0x4ed   : > { %v619_v58 = vpop.f32.mrf.mxu1 }
 0x4ee   : > { %v620_v59 = vadd.f32 %v619_v58, %v435_v57 }
 0x4ef   : > { %v1593_v60 = vpop.f32.mrf.mxu1 }
 0x4f0   : > { %v625_v61 = vsel %vm578_vm3, %v620_v59, -inf }
 0x4f1   : > { %626 = vmax.xlane.f32.xlu0 %v625_v61  ;;  %v622_v62 = vpop.f32.mrf.mxu1 }
 0x4f3   : > { %v1594_v63 = vpop.f32.mrf.mxu1 }
 0x4f5   : > { %v773_v1 = vpop.f32.mrf.mxu1 }
 0x4f6   : > { %v774_v2 = vadd.f32 %v773_v1, %v435_v57 }
 0x4f7   : > { %v1605_v3 = vpop.f32.mrf.mxu1 }
 0x4f8   : > { %v779_v5 = vsel %vm578_vm3, %v774_v2, -inf }
 0x4f9   : > { %780 = vmax.xlane.f32.xlu1 %v779_v5  ;;  %v776_v6 = vpop.f32.mrf.mxu1 }
 0x4fb   : > { %v1606_v7 = vpop.f32.mrf.mxu1 }
 0x4fd   : > { %v925_v8 = vpop.f32.mrf.mxu1 }
 0x4fe   : > { %v926_v9 = vadd.f32 %v925_v8, %v435_v57 }
 0x4ff   : > { %v1617_v10 = vpop.f32.mrf.mxu1 }
 0x500   : > { %v931_v11 = vsel %vm578_vm3, %v926_v9, -inf }
 0x501   : > { %932 = vmax.xlane.f32.xlu0 %v931_v11  ;;  %v928_v12 = vpop.f32.mrf.mxu1  ;;  %v1794_v11 = vld [vmem:[%s2552_s6 + $0x8] sm:$0xff]  }
 0x502   : > { %1638 = vmatpush3.bf16.msra.mxu1 %v1794_v11  ;;  %v1795_v12 = vld [vmem:[%s2552_s6] sm:$0xff]  }
 0x503   : > { %v1618_v13 = vpop.f32.mrf.mxu1  ;;  %1639 = vmatprep.subr.bf16.mxu1 %v2068_v4 }
 0x505   : > { %v1077_v15 = vpop.f32.mrf.mxu1 }
 0x506   : > { %v1078_v16 = vadd.f32 %v1077_v15, %v435_v57  ;;  %1640 = vmatpush3.bf16.msra.mxu1 %v1795_v12 }
 0x507   : > { %v1629_v17 = vpop.f32.mrf.mxu1  ;;  %1653 = vmatprep.subr.bf16.mxu1 %v2068_v4 }
 0x508   : > { %v1083_v18 = vsel %vm578_vm3, %v1078_v16, -inf }
 0x509   : > { %1084 = vmax.xlane.f32.xlu0 %v1083_v18  ;;  %v1080_v19 = vpop.f32.mrf.mxu1 }
 0x50b   : > { %v1630_v20 = vpop.f32.mrf.mxu1 }
 0x57a   : > { %v627_v21 = vpop.xlane.xlu0 %626 }
 0x57b   : > { %v628_v22 = vsub.f32 %v620_v59, %v627_v21 }
 0x57d   : > { %v629_v23 = vmul.f32 1.442695, %v628_v22 }
 0x57f   : > { %1804 = vpow2.f32 %v629_v23 }
 0x582   : > { %v781_v24 = vpop.xlane.xlu1 %780 }
 0x583   : > { %v782_v25 = vsub.f32 %v774_v2, %v781_v24 }
 0x585   : > { %v783_v26 = vmul.f32 1.442695, %v782_v25 }
 0x587   : > { %1806 = vpow2.f32 %v783_v26 }
 0x58a   : > { %v933_v29 = vpop.xlane.xlu0 %932 }
 0x58b   : > { %v934_v38 = vsub.f32 %v926_v9, %v933_v29 }
 0x58c   : > { %v1805_v27 = vpop.eup %1804 }
 0x58d   : > { %v631_v28 = vsel %vm578_vm3, %v1805_v27, 0.0  ;;  %v935_v40 = vmul.f32 1.442695, %v934_v38 }
 0x58e   : > { %632 = vadd.xlane.f32.xlu1 %v631_v28 }
 0x592   : > { %v1085_v30 = vpop.xlane.xlu0 %1084 }
 0x593   : > { %v1086_v31 = vsub.f32 %v1078_v16, %v1085_v30 }
 0x594   : > { %v1807_v32 = vpop.eup %1806 }
 0x595   : > { %v1087_v33 = vmul.f32 1.442695, %v1086_v31  ;;  %v785_v34 = vsel %vm578_vm3, %v1807_v32, 0.0 }
 0x596   : > { %786 = vadd.xlane.f32.xlu0 %v785_v34 }
 0x597   : > { %1808 = vpow2.f32 %v1087_v33 }
 0x598   : > { %1810 = vpow2.f32 %v935_v40 }
 0x59f   : > { %638 = vrot.lane.b32.xlu1 %v574_v35, %s2092_s12 }
 0x5a4   : > { %v1809_v36 = vpop.eup %1808 }
 0x5a5   : > { %v1089_v37 = vsel %vm578_vm3, %v1809_v36, 0.0  ;;  %v1811_v41 = vpop.eup %1810 }
 0x5a6   : > { %1090 = vadd.xlane.f32.xlu0 %v1089_v37  ;;  %v937_v42 = vsel %vm578_vm3, %v1811_v41, 0.0  ;;  %v1797_v37 = vld [vmem:[#allocation11] sm:$0xff]  }
 0x5bc   : > { %791 = vrot.lane.b32.xlu0 %v574_v35, %s2086_s28  ;;  %s1548_s28 = sshll.u32 %s2170_s17, 7 }
 0x5c3   : > { %938 = vadd.xlane.f32.xlu1 %v937_v42 }
 0x5d4   : > { %943 = vrot.lane.b32.xlu1 %v574_v35, %s2579_s21  ;;  %s2504_s21 = scalar_lea.hbm %s2556_s10, %s1548_s28 }
 0x5d8   : > { %1095 = vrot.lane.b32.xlu1 %v574_v35, %s2580_s29  ;;  %s1372_s29 = scalar_lea.sflag [#allocation4], %s426_s11 }
 0x617   : > { %v633_v14 = vpop.xlane.xlu1 %632 }
 0x618   : > { %1812 = vrcp.f32 %v633_v14  ;;  %v1537_v14 = vld [vmem:[#allocation10] ss:$0 sm:$0xff] }
 0x61b   : > { %v639_v43 = vpop.permute.xlu1 %638 }
 0x61c   : > { %v645_v44 = vsel %vm643_vm4, %v639_v43, 0 }
 0x61d   : > { %1596 = vmatpush3.bf16.msra.mxu0 %v645_v44 }
 0x61e   : > { %1607 = vmatprep.subr.bf16.mxu0 %v2068_v4 }
 0x61f   : > { %v787_v45 = vpop.xlane.xlu0 %786 }
 0x620   : > { %1814 = vrcp.f32 %v787_v45  ;;  %v1798_v45 = vld [vmem:[%s2555_s9 + $0x18] sm:$0xff]  }
 0x625   : > { %v1813_v46 = vpop.eup %1812 }
 0x626   : > { %v635_v47 = vmul.f32 %v1813_v46, %v1805_v27  ;;  %v1799_v46 = vld [vmem:[%s2555_s9 + $0x10] sm:$0xff]  }
 0x628   : > { %v636_v48 = vpack.c.bf16 %v635_v47, %v635_v47  ;;  %v1800_v47 = vld [vmem:[%s2555_s9 + $0x8] sm:$0xff]  }
 0x62a   : > { %1598 = vmatmul.mubr.msk.bf16.vlgmr.msra.gmra.mxu0 %vm578_vm3, %v636_v48  ;;  %v1801_v48 = vld [vmem:[%s2555_s9] sm:$0xff]  }
 0x62b   : > { %1609 = vmatprep.mubr.msk.bf16.mxu0 %vm2069_vm1, %v2068_v4 }
 0x62d   : > { %v1815_v49 = vpop.eup %1814 }
 0x62e   : > { %v789_v51 = vmul.f32 %v1815_v49, %v1807_v32 }
 0x62f   : > { %v1091_v50 = vpop.xlane.xlu0 %1090 }
 0x630   : > { %v790_v53 = vpack.c.bf16 %v789_v51, %v789_v51 }
 0x633   : > { %v792_v39 = vpop.permute.xlu0 %791 }
 0x634   : > { %v797_v52 = vsel %vm643_vm4, %v792_v39, 0 }
 0x635   : > { %1608 = vmatpush3.bf16.msra.mxu0 %v797_v52 }
 0x636   : > { %1619 = vmatprep.subr.bf16.mxu0 %v2068_v4 }
 0x638   : > { %1610 = vmatmul.mubr.msk.bf16.vlgmr.msra.gmra.mxu0 %vm578_vm3, %v790_v53 }
 0x639   : > { %1621 = vmatprep.mubr.msk.bf16.mxu0 %vm2069_vm1, %v2068_v4 }
 0x64c   : > { %v939_v54 = vpop.xlane.xlu1 %938 }
 0x64d   : > { %1816 = vrcp.f32 %v939_v54 }
 0x64e   : > { %1818 = vrcp.f32 %v1091_v50 }
 0x650   : > { %v944_v55 = vpop.permute.xlu1 %943 }
 0x651   : > { %v949_v56 = vsel %vm643_vm4, %v944_v55, 0 }
 0x652   : > { %1620 = vmatpush3.bf16.msra.mxu0 %v949_v56 }
 0x653   : > { %1631 = vmatprep.subr.bf16.mxu0 %v2068_v4 }
 0x654   : > { %v1096_v59 = vpop.permute.xlu1 %1095 }
 0x655   : > { %v1101_v62 = vsel %vm643_vm4, %v1096_v59, 0 }
 0x65a   : > { %v1817_v57 = vpop.eup %1816 }
 0x65b   : > { %v941_v58 = vmul.f32 %v1817_v57, %v1811_v41  ;;  %v1819_v61 = vpop.eup %1818 }
 0x65c   : > { %v1093_v63 = vmul.f32 %v1819_v61, %v1809_v36  ;;  %v1796_v36 = vld [vmem:[#allocation11 + $0x8] sm:$0xff]  }
 0x65d   : > { %v942_v60 = vpack.c.bf16 %v941_v58, %v941_v58 }
 0x65e   : > { %v1094_v1 = vpack.c.bf16 %v1093_v63, %v1093_v63 }
 0x65f   : > { %1622 = vmatmul.mubr.msk.bf16.vlgmr.msra.gmra.mxu0 %vm578_vm3, %v942_v60 }
 0x660   : > { %1632 = vmatpush3.bf16.msra.mxu0 %v1101_v62  ;;  %1633 = vmatprep.mubr.msk.bf16.mxu0 %vm2069_vm1, %v2068_v4 }
 0x661   : > { %1645 = vmatprep.subr.bf16.mxu0 %v2068_v4 }
 0x667   : > { %1634 = vmatmul.mubr.msk.bf16.vlgmr.msra.gmra.mxu0 %vm578_vm3, %v1094_v1 }
 0x668   : > { %1649 = vmatprep.mubr.msk.bf16.mxu0 %vm2069_vm1, %v2068_v4  ;;  %1646 = vmatpush3.bf16.msra.mxu0 %v1796_v36 }
 0x669   : > { %1647 = vmatprep.subr.bf16.mxu0 %v2068_v4 }
 0x66c   : > { %1648 = vmatpush3.bf16.msra.mxu0 %v1797_v37 }
 0x6ea   : > { %v681_v2 = vpop.f32.mrf.mxu0 }
 0x6ec   : > { %v1599_v3 = vpop.f32.mrf.mxu0 }
 0x6ee   : > { %v684_v5 = vpop.f32.mrf.mxu0 }
 0x6f0   : > { %v1600_v6 = vpop.f32.mrf.mxu0 }
 0x6f8   : > { %v833_v7 = vpop.f32.mrf.mxu0 }
 0x6f9   : > { %1144 = vrot.lane.b32.xlu0 %v833_v7, %s2581_s25  ;;  %s2093_s25 = smov [#allocation13]  }
 0x6fa   : > { %v1611_v8 = vpop.f32.mrf.mxu0  ;;  %s1986_s30 = sshll.u32 %s2093_s25, 4  ;;  %s1987_s30 = int_to_ptr.vmem [resolvable:$false] %s1986_s30 }
 0x6fb   : > { %s1988_s18 = scalar_lea.vmem %s1987_s30, 256 }
 0x6fc   : > { %v836_v9 = vpop.f32.mrf.mxu0 }
 0x6fe   : > { %v1612_v10 = vpop.f32.mrf.mxu0 }
 0x71f   : > { %v985_v13 = vpop.f32.mrf.mxu0 }
 0x720   : > { %1148 = vrot.lane.b32.xlu1 %v985_v13, %s2582_s20 }
 0x721   : > { %v1623_v15 = vpop.f32.mrf.mxu0 }
 0x723   : > { %v988_v16 = vpop.f32.mrf.mxu0 }
 0x725   : > { %v1624_v17 = vpop.f32.mrf.mxu0 }
 0x727   : > { %v1137_v18 = vpop.f32.mrf.mxu0 }
 0x728   : > { %1152 = vrot.lane.b32.xlu0 %v1137_v18, %s2089_s27 }
 0x729   : > { %v1635_v19 = vpop.f32.mrf.mxu0 }
 0x72b   : > { %v1140_v20 = vpop.f32.mrf.mxu0 }
 0x72d   : > { %v1636_v21 = vpop.f32.mrf.mxu0 }
 0x76b   : > { %v1145_v22 = vpop.permute.xlu0 %1144 }
 0x76c   : > { %v1155_v24 = vsel %vm578_vm3, %v681_v2, %v1145_v22 }
 0x792   : > { %v1149_v23 = vpop.permute.xlu1 %1148 }
 0x793   : > { %v1157_v25 = vsel %vm1156_vm5, %v1155_v24, %v1149_v23 }
 0x79a   : > { %v1153_v26 = vpop.permute.xlu0 %1152 }
 0x79b   : > { %v1159_v27 = vsel %vm1158_vm6, %v1157_v25, %v1153_v26 }
 0x79c   : > { %v1160_v28 = vpack.c.bf16 %v1159_v27, %v1159_v27 }
 0x79e   : > { %1642 = vmatmul.mubr.msk.bf16.vlgmr.msra.gmra.mxu1 %vm461_vm0, %v1160_v28 }
 0x79f   : > { %1661 = vmatprep.mubr.msk.bf16.mxu1 %vm2069_vm1, %v2068_v4  ;;  %1654 = vmatpush3.bf16.msra.mxu1 %v1798_v45 }
 0x7a0   : > { %1655 = vmatprep.subr.bf16.mxu1 %v2068_v4 }
 0x7a3   : > { %1656 = vmatpush3.bf16.msra.mxu1 %v1799_v46 }
 0x7a4   : > { %1657 = vmatprep.subr.bf16.mxu1 %v2068_v4 }
 0x7a7   : > { %1658 = vmatpush3.bf16.msra.mxu1 %v1800_v47 }
 0x7a8   : > { %1659 = vmatprep.subr.bf16.mxu1 %v2068_v4 }
 0x7ab   : > { %1660 = vmatpush3.bf16.msra.mxu1 %v1801_v48 }
 0x85e   : > { %v1210_v29 = vpop.f32.mrf.mxu1 }
 0x85f   : > { %v1216_v30 = vadd.f32 %v1210_v29, %v2288_v0 }
 0x860   : > { %v1643_v31 = vpop.f32.mrf.mxu1 }
 0x861   : > { %v1217_v32 = vmul.f32 %v1216_v30, %v1216_v30 }
 0x862   : > { %v1213_v33 = vpop.f32.mrf.mxu1 }
 0x863   : > { %v1218_v34 = vsel %vm461_vm0, %v1217_v32, 0.0 }
 0x864   : > { %1219 = vadd.xlane.f32.xlu1 %v1218_v34  ;;  %v1644_v35 = vpop.f32.mrf.mxu1 }
 0x8ed   : > { %v1220_v38 = vpop.xlane.xlu1 %1219 }
 0x8ee   : > { %v1221_v40 = vmul.f32 0.03125, %v1220_v38 }
 0x8f0   : > { %v1222_v41 = vadd.f32 1e-06, %v1221_v40 }
 0x8f2   : > { %1820 = vrsqrt.f32 %v1222_v41 }
 0x8ff   : > { %v1821_v42 = vpop.eup %1820 }
 0x900   : > { %v1224_v0 = vmul.f32 %v1821_v42, %v1216_v30 }
 0x902   : > { %v1231_v43 = vmul.f32 %v1537_v14, %v1224_v0 }
 0x904   : > { %v1232_v44 = vpack.c.bf16 %v1231_v43, %v1231_v43 }
 0x906   : > { %1650 = vmatmul.mubr.msk.bf16.vlgmr.msra.gmra.mxu0 %vm461_vm0, %v1232_v44 }
 0x9c6   : > { %v1282_v49 = vpop.f32.mrf.mxu0 }
 0x9c7   : > { %1296 = vrot.lane.b32.xlu0 %v1282_v49, %s2092_s12  ;;  %v1541_v52 = vmul.f32 -1.442695, %v1282_v49  ;;  %s1520_s12 = sshll.u32 %s426_s11, 3 }
 0x9c8   : > { %v1651_v50 = vpop.f32.mrf.mxu0  ;;  %s428_s20 = scalar_lea.vmem [#allocation13], %s1520_s12 }
 0x9c9   : > { %1822 = vpow2.f32 %v1541_v52  ;;  %s1385_s27 = sshll.u32 %s428_s20, 4  ;;  %s2506_s27 = int_to_ptr.vmem [resolvable:$true] %s1385_s27 }
 0x9ca   : > { %v1285_v51 = vpop.f32.mrf.mxu0  ;;  %s1982_s17 = scalar_lea.vmem %s2506_s27, 128  ;;  %p1989_p7 = scmp.lt.s32.totalorder %s2506_s27, %s1987_s30 }
 0x9cb   : > { %p1983_p2 = scmp.ne.s32.totalorder %s2506_s27, %s1982_s17  ;;  %p1990_p5 = scmp.lt.s32.totalorder %s1988_s18, %s1982_s17 }
 0x9cc   : > { %v1652_v39 = vpop.f32.mrf.mxu0 }
 0x9cd   : > { %p1984_p3 = pnand %p1983_p2, %p2583_p9  ;;  %p1991_p13 = por %p1990_p5, %p1989_p7 }
 0x9cf   : > { %p1985_p4 = pneg %p1984_p3 }
 0x9d1   : > { %p1992_p6 = pnand %p1991_p13, %p1985_p4 }
 0x9d6   : > { %v1823_v53 = vpop.eup %1822 }
 0x9d7   : > { %v1291_v54 = vadd.f32 1.0, %v1823_v53 }
 0x9d9   : > { %1824 = vrcp.f32 %v1291_v54 }
 0x9e6   : > { %v1825_v55 = vpop.eup %1824 }
 0x9e7   : > { %v1294_v4 = vmul.f32 %v1825_v55, %v1282_v49 }
 0xa39   : > { %v1297_v56 = vpop.permute.xlu0 %1296 }
 0xa3a   : > { %v1299_v57 = vmul.f32 %v1297_v56, %v1294_v4 }
 0xa3c   : > { %v1300_v58 = vpack.c.bf16 %v1299_v57, %v1299_v57 }
 0xa3e   : > { %1662 = vmatmul.mubr.msk.bf16.vlgmr.msra.gmra.mxu1 %vm1325_vm7, %v1300_v58 }
 0xafe   : > { %v1363_v59 = vpop.f32.mrf.mxu1 }
 0xaff   : > { %v1369_v60 = vadd.f32 %v1363_v59, %v1216_v30 }
 0xb00   : > { %v1663_v61 = vpop.f32.mrf.mxu1 }
 0xb01   : > { %1370 = vst.msk [vmem:[%s428_s20] sm:$0xff] %vm461_vm0, %v1369_v60 }
 0xb02   : > { %v1366_v62 = vpop.f32.mrf.mxu1 }
 0xb03   : > { %1995 = shalt.err (!%p1992_p6)
}
 0xb04   : > { %s1996_s12 = scalar_lea.hbm %s2504_s21, 128  ;;  %s2000_s20 = scalar_lea.hbm %s2556_s10, 256 }
 0xb05   : > { %p1997_p10 = scmp.ne.s32.totalorder %s2504_s21, %s1996_s12  ;;  %p2001_p11 = scmp.lt.s32.totalorder %s2504_s21, %s2556_s10 }
 0xb06   : > { %p2002_p0 = scmp.lt.s32.totalorder %s2000_s20, %s1996_s12 }
 0xb07   : > { %p1998_p8 = pnand %p1997_p10, %p2583_p9 }
 0xb08   : > { %p2003_p1 = por %p2002_p0, %p2001_p11 }
 0xb09   : > { %p1999_p12 = pneg %p1998_p8 }
 0xb0b   : > { %p2004_p2 = pnand %p2003_p1, %p1999_p12 }
 0xb0d   : > { %2007 = shalt.err (!%p2004_p2)
}
 0xb0e   : > { %1689 = dma.vmem_to_hbm [thread:$0]  (%p2583_p9), %s2506_s27, 128, %s2504_s21, %s1372_s29   ;;  %v1664_v63 = vpop.f32.mrf.mxu1 }
 0xb0f PF: > { %p1726_p3 = scmp.ge.s32.totalorder %s2058_s16, 2  ;;  %s1397_s17 = sand.u32 1, %s2046_s13  }
 0xb10   : > { %p2584_p4 = scmp.ne.s32.totalorder %s2566_s24, 0  ;;  %s1398_s25 = scalar_lea.sflag [#allocation4], %s1397_s17 }
 0xb12   : > { %p1711_p7 = pnand %p1726_p3, %p2584_p4 }
 0xb14   : > { %p1712_p5 = pneg %p1711_p7 }
 0xb16   : > { %2041 = dma.done.wait (%p1712_p5), %s1398_s25, 128  }
 0xb17   : > { %2043 = vsyncadd (%p1712_p5), %s1398_s25, 4294967168  ;;  %s2585_s23 = sld [smem:[#allocation19_spill]]  ;;  %p24_p13 = scmp.ge.s32.totalorder %s2174_s19, 4  }
 0xb18   : > { %s2586_s13 = smov %s2050_s14  ;;  %s2587_s14 = smov %s2054_s15 }
 0xb19   : > { %s2589_s16 = smov %s2174_s19  ;;  %26 = sbr.rel (!%p24_p13) target bundleno = 7 (0x7), region = 120 }
 0xb1d   : > { %s2588_s15 = smov %s2585_s23 }
 0xb1e   :  { %1403 = vsyncpa [#allocation3], 1 }
 0xb1f   :  { %1405 = vsyncpa [#allocation3 + $0x1], 1 }
 0xb20   :  { %1406 = vsyncpa [#allocation6], 1 }
 0xb21   :  { %1407 = vsyncpa [#allocation9], 1 }
 0xb22   :  { %1408 = vsyncpa [#allocation12], 1 }
 0xb23   :  { %1409 = vsyncpa [#allocation4], 1 }
 0xb24   :  { %1411 = vsyncpa [#allocation4 + $0x1], 1 }

</bundles_post_ra>
